<compile_context>
chip_gen: v7x
topology: tpu7x:2x2x1
jax: 0.10.0
libtpu: 0.0.40
codegen_flags: <defaults>
</compile_context>

<pallas_src>
import functools

import jax
import jax.numpy as jnp
from jax import lax
from jax.experimental import pallas as pl
from jax.experimental.pallas import tpu as pltpu


def _round_up(x, m):
    return ((x + m - 1) // m) * m


# ---------------------------------------------------------------------------
# Fused kernel: one image per grid step, channel-major (channels, pixels).
# ---------------------------------------------------------------------------
def _encoder_kernel(x_ref, w1_ref, b1_ref, w2_ref, b2_ref, w3_ref, b3_ref,
                    wh_ref, bh_ref, out_ref, strip, buf_a, buf_b,
                    *, Cp, Mc, Mtot, Wp, kh, kl, valid_spans):
    G = Mtot - Mc

    def conv_relu(src_ref, w_ref, b_ref, k):
        # im2col strip: rows [t*Cp, (t+1)*Cp) <- tap-t lane-shifted slice of src.
        # Row blocks are sublane-aligned; lane shifts are static offsets.
        for t in range(k * k):
            di, dj = divmod(t, k)
            off = di * Wp + dj
            strip[pl.ds(t * Cp, Cp), :] = src_ref[:, pl.ds(off, Mc)]
        taps = strip[pl.ds(0, k * k * Cp), :]                 # (k*k*Cp, Mc)
        # Single MXU matmul per layer (K = k*k*Cp), lane-dense (Cout, Mc) out.
        acc = jnp.dot(w_ref[...], taps, preferred_element_type=jnp.float32)
        return jnp.maximum(acc + b_ref[...], 0.0)

    # Guard columns must be zero every grid step (scratch persists across the
    # grid; shifted tap reads go up to Mc - 1 + max_off < Mtot).
    zeros_g = jnp.zeros((Cp, G), jnp.float32)
    buf_a[:, pl.ds(Mc, G)] = zeros_g
    buf_b[:, pl.ds(Mc, G)] = zeros_g

    # conv1 + ReLU; zero everything outside conv1's valid output window so
    # conv2 (padding=1) reads exactly the zero padding it expects.
    act1 = conv_relu(x_ref, w1_ref, b1_ref, kh)
    lane = lax.broadcasted_iota(jnp.int32, (1, Mc), 1)
    valid = jnp.zeros((1, Mc), dtype=jnp.bool_)
    for start, size in valid_spans:
        valid = jnp.logical_or(valid,
                               jnp.logical_and(lane >= start, lane < start + size))
    buf_a[:, pl.ds(0, Mc)] = jnp.where(valid, act1, 0.0)

    # conv2 + ReLU (its valid outputs only read conv1-valid or zeroed pixels).
    buf_b[:, pl.ds(0, Mc)] = conv_relu(buf_a, w2_ref, b2_ref, kh)

    # conv3 + ReLU (valid conv; reuse buf_a, its guard stays zero).
    buf_a[:, pl.ds(0, Mc)] = conv_relu(buf_b, w3_ref, b3_ref, kl)

    # Fused mean / logsigma heads (+ ReLU), full-width lane-dense store.
    out_ref[...] = conv_relu(buf_a, wh_ref, bh_ref, kl)


# ---------------------------------------------------------------------------
# Host-side wrapper: layout conversion + the single pallas_call.
# ---------------------------------------------------------------------------
def encoder_forward(params, x):
    """PyTorch-semantics Encoder forward. x: (N, 1, H, W) -> (mu, logsigma) NCHW."""
    N, cin, H, W = x.shape
    z = params["conv1_w"].shape[0]
    kh = params["conv1_w"].shape[2]          # kernel_size_high (conv1/conv2, pad=1)
    kl = params["conv3_w"].shape[2]          # kernel_size_low  (conv3/heads, pad=0)
    Cp = _round_up(z, 8)

    # Common padded spatial grid shared by every layer (conv1+conv2 pad by 1).
    pad_total = 2
    Hp, Wp = H + 2 * pad_total, W + 2 * pad_total

    # Grid anchor / extent of each layer's output (stride 1 everywhere).
    a_in = pad_total
    a1 = a_in - 1
    e1h, e1w = H + 2 - kh + 1, W + 2 - kh + 1          # conv1 (padding=1)
    a2 = a1 - 1
    e2h, e2w = e1h + 2 - kh + 1, e1w + 2 - kh + 1      # conv2 (padding=1)
    e3h, e3w = e2h - kl + 1, e2w - kl + 1              # conv3 (no padding)
    e4h, e4w = e3h - kl + 1, e3w - kl + 1              # mean / logsigma
    assert a2 == 0 and e4h > 0 and e4w > 0

    M_img = Hp * Wp
    Mc = _round_up(M_img, 128)                          # lane-aligned compute width
    max_off = max((kh - 1) * Wp + (kh - 1), (kl - 1) * Wp + (kl - 1))
    G = _round_up(max_off, 128)                         # zero guard columns
    Mtot = Mc + G

    # Input slab (N, Cp, Mtot): channel-major, image anchored at rows/cols a_in.
    xg = jnp.zeros((N, Cp, Hp, Wp), jnp.float32)
    xg = xg.at[:, :cin, a_in:a_in + H, a_in:a_in + W].set(x.astype(jnp.float32))
    x_slab = jnp.pad(xg.reshape(N, Cp, M_img),
                     ((0, 0), (0, 0), (0, Mtot - M_img)))

    # Weights as (Cout_pad, k*k*Cp) tap-major matrices; heads fused along rows.
    def wmat(w):
        cout, cin_, k, _ = w.shape
        wt = jnp.transpose(w, (0, 2, 3, 1)).astype(jnp.float32)   # (Cout,k,k,Cin)
        wt = jnp.pad(wt, ((0, Cp - cout), (0, 0), (0, 0), (0, Cp - cin_)))
        return wt.reshape(Cp, k * k * Cp)

    def bvec(b):
        return jnp.pad(b.astype(jnp.float32), (0, Cp - b.shape[0])).reshape(Cp, 1)

    w1, w2, w3 = wmat(params["conv1_w"]), wmat(params["conv2_w"]), wmat(params["conv3_w"])
    wh = jnp.concatenate([wmat(params["mean_w"]), wmat(params["logsigma_w"])], axis=0)
    b1, b2, b3 = bvec(params["conv1_b"]), bvec(params["conv2_b"]), bvec(params["conv3_b"])
    bh = jnp.concatenate([bvec(params["mean_b"]), bvec(params["logsigma_b"])], axis=0)

    # Flat-index spans of conv1's VALID output pixels (everything else is
    # zeroed in-kernel -> supplies conv2's zero padding).
    valid_spans = tuple((i * Wp + a1, e1w) for i in range(a1, a1 + e1h))

    kernel = functools.partial(
        _encoder_kernel, Cp=Cp, Mc=Mc, Mtot=Mtot, Wp=Wp, kh=kh, kl=kl,
        valid_spans=valid_spans)

    kmax = max(kh, kl)
    out = pl.pallas_call(
        kernel,
        out_shape=jax.ShapeDtypeStruct((N, 2 * Cp, Mc), jnp.float32),
        grid_spec=pltpu.PrefetchScalarGridSpec(
            num_scalar_prefetch=0,
            grid=(N,),
            in_specs=[
                pl.BlockSpec((None, Cp, Mtot), lambda n: (n, 0, 0)),
                pl.BlockSpec(w1.shape, lambda n: (0, 0)),
                pl.BlockSpec(b1.shape, lambda n: (0, 0)),
                pl.BlockSpec(w2.shape, lambda n: (0, 0)),
                pl.BlockSpec(b2.shape, lambda n: (0, 0)),
                pl.BlockSpec(w3.shape, lambda n: (0, 0)),
                pl.BlockSpec(b3.shape, lambda n: (0, 0)),
                pl.BlockSpec(wh.shape, lambda n: (0, 0)),
                pl.BlockSpec(bh.shape, lambda n: (0, 0)),
            ],
            out_specs=pl.BlockSpec((None, 2 * Cp, Mc), lambda n: (n, 0, 0)),
            scratch_shapes=[
                pltpu.VMEM((kmax * kmax * Cp, Mc), jnp.float32),   # im2col strip
                pltpu.VMEM((Cp, Mtot), jnp.float32),               # activation A
                pltpu.VMEM((Cp, Mtot), jnp.float32),               # activation B
            ]),
        compiler_params=pltpu.CompilerParams(
            dimension_semantics=("parallel",)),
    )(x_slab, w1, b1, w2, b2, w3, b3, wh, bh)

    # Slice the valid head region off the grid and convert to NCHW.
    out = out[:, :, :M_img].reshape(N, 2 * Cp, Hp, Wp)[:, :, :e4h, :e4w]
    return out[:, :z], out[:, Cp:Cp + z]


# ---------------------------------------------------------------------------
# Parameter init (PyTorch Conv2d default-style uniform init)
# ---------------------------------------------------------------------------
def init_params(key, kernel_size_high, kernel_size_low, z_dim):
    shapes = {
        "conv1": (z_dim, 1, kernel_size_high, kernel_size_high),
        "conv2": (z_dim, z_dim, kernel_size_high, kernel_size_high),
        "conv3": (z_dim, z_dim, kernel_size_low, kernel_size_low),
        "mean": (z_dim, z_dim, kernel_size_low, kernel_size_low),
        "logsigma": (z_dim, z_dim, kernel_size_low, kernel_size_low),
    }
    params = {}
    for name, shp in shapes.items():
        key, kw_, kb_ = jax.random.split(key, 3)
        fan_in = shp[1] * shp[2] * shp[3]
        bound = 1.0 / jnp.sqrt(fan_in)
        params[f"{name}_w"] = jax.random.uniform(kw_, shp, jnp.float32, -bound, bound)
        params[f"{name}_b"] = jax.random.uniform(kb_, (shp[0],), jnp.float32, -bound, bound)
    return params


# ---------------------------------------------------------------------------
# Pure-JAX reference (lax conv) for correctness verification
# ---------------------------------------------------------------------------
def _conv_ref(x, w, b, padding):
    out = jax.lax.conv_general_dilated(
        x, w, window_strides=(1, 1),
        padding=[(padding, padding), (padding, padding)],
        dimension_numbers=("NCHW", "OIHW", "NCHW"))
    return jnp.maximum(out + b[None, :, None, None], 0.0)


def encoder_ref(params, x):
    x = _conv_ref(x, params["conv1_w"], params["conv1_b"], 1)
    x = _conv_ref(x, params["conv2_w"], params["conv2_b"], 1)
    x = _conv_ref(x, params["conv3_w"], params["conv3_b"], 0)
    mu = _conv_ref(x, params["mean_w"], params["mean_b"], 0)
    ls = _conv_ref(x, params["logsigma_w"], params["logsigma_b"], 0)
    return mu, ls


if __name__ == "__main__":
    # Small, module-consistent configuration (conv1 expects a 1-channel input).
    kernel_size_high = 3     # conv1/conv2, padding=1 -> spatial preserved
    kernel_size_low = 2      # conv3/mean/logsigma, no padding -> shrinks by 1 each
    z_dim = 8
    N, H, W = 2, 16, 16

    key = jax.random.PRNGKey(0)
    key, kx = jax.random.split(key)
    x = jax.random.normal(kx, (N, 1, H, W), jnp.float32)
    params = init_params(key, kernel_size_high, kernel_size_low, z_dim)

    fwd = jax.jit(functools.partial(encoder_forward, params))
    mu, logsigma = fwd(x)
    jax.block_until_ready((mu, logsigma))

    # Verify against the pure-JAX reference.
    mu_ref, ls_ref = jax.jit(functools.partial(encoder_ref, params))(x)
    assert mu.shape == (N, z_dim, H - 2, W - 2) == mu_ref.shape
    assert logsigma.shape == ls_ref.shape
    assert jnp.allclose(mu, mu_ref, atol=2e-4, rtol=2e-4)
    assert jnp.allclose(logsigma, ls_ref, atol=2e-4, rtol=2e-4)

    print("KERNEL_OK")
</pallas_src>

<mosaic_0001>
module attributes {stable_mosaic.version = 11 : i64} {
  func.func @_encoder_kernel(%arg0: i32, %arg1: memref<1x8x640xf32, #tpu.memory_space<vmem>>, %arg2: memref<8x72xf32, #tpu.memory_space<vmem>>, %arg3: memref<8x1xf32, #tpu.memory_space<vmem>>, %arg4: memref<8x72xf32, #tpu.memory_space<vmem>>, %arg5: memref<8x1xf32, #tpu.memory_space<vmem>>, %arg6: memref<8x32xf32, #tpu.memory_space<vmem>>, %arg7: memref<8x1xf32, #tpu.memory_space<vmem>>, %arg8: memref<16x32xf32, #tpu.memory_space<vmem>>, %arg9: memref<16x1xf32, #tpu.memory_space<vmem>>, %arg10: memref<1x16x512xf32, #tpu.memory_space<vmem>>, %arg11: memref<72x512xf32, #tpu.memory_space<vmem>>, %arg12: memref<8x640xf32, #tpu.memory_space<vmem>>, %arg13: memref<8x640xf32, #tpu.memory_space<vmem>>) attributes {dimension_semantics = [#tpu.dimension_semantics<parallel>], iteration_bounds = array<i64: 2>, scalar_prefetch = 0 : i64, scratch_operands = 3 : i64, tpu.core_type = #tpu.core_type<tc>, window_params = [{transform_indices = @transform_0, window_bounds = array<i64: 1, 8, 640>}, {pipeline_mode = #tpu.pipeline_mode<synchronous>, transform_indices = @transform_1, window_bounds = array<i64: 8, 72>}, {pipeline_mode = #tpu.pipeline_mode<synchronous>, transform_indices = @transform_2, window_bounds = array<i64: 8, 1>}, {pipeline_mode = #tpu.pipeline_mode<synchronous>, transform_indices = @transform_3, window_bounds = array<i64: 8, 72>}, {pipeline_mode = #tpu.pipeline_mode<synchronous>, transform_indices = @transform_4, window_bounds = array<i64: 8, 1>}, {pipeline_mode = #tpu.pipeline_mode<synchronous>, transform_indices = @transform_5, window_bounds = array<i64: 8, 32>}, {pipeline_mode = #tpu.pipeline_mode<synchronous>, transform_indices = @transform_6, window_bounds = array<i64: 8, 1>}, {pipeline_mode = #tpu.pipeline_mode<synchronous>, transform_indices = @transform_7, window_bounds = array<i64: 16, 32>}, {pipeline_mode = #tpu.pipeline_mode<synchronous>, transform_indices = @transform_8, window_bounds = array<i64: 16, 1>}, {transform_indices = @transform_9, window_bounds = array<i64: 1, 16, 512>}]} {
    %cst = arith.constant 0.000000e+00 : f32
    %0 = vector.broadcast %cst : f32 to vector<8x128xf32>
    %c0 = arith.constant 0 : index
    %c512 = arith.constant 512 : index
    %1 = vector.load %arg12[%c0, %c512] : memref<8x640xf32, #tpu.memory_space<vmem>>, vector<8x128xf32>
    tpu.vector_store %arg12[%c0, %c512], %0 {strides = array<i32>} : memref<8x640xf32, #tpu.memory_space<vmem>>, vector<8x128xf32>,
    %c0_0 = arith.constant 0 : index
    %c512_1 = arith.constant 512 : index
    %2 = vector.load %arg13[%c0_0, %c512_1] : memref<8x640xf32, #tpu.memory_space<vmem>>, vector<8x128xf32>
    tpu.vector_store %arg13[%c0_0, %c512_1], %0 {strides = array<i32>} : memref<8x640xf32, #tpu.memory_space<vmem>>, vector<8x128xf32>,
    %c0_2 = arith.constant 0 : index
    %c0_3 = arith.constant 0 : index
    %c0_4 = arith.constant 0 : index
    %3 = vector.load %arg1[%c0_2, %c0_3, %c0_4] : memref<1x8x640xf32, #tpu.memory_space<vmem>>, vector<1x8x512xf32>
    %4 = vector.shape_cast %3 : vector<1x8x512xf32> to vector<8x512xf32>
    %c0_5 = arith.constant 0 : index
    %c0_6 = arith.constant 0 : index
    %5 = vector.load %arg11[%c0_5, %c0_6] : memref<72x512xf32, #tpu.memory_space<vmem>>, vector<8x512xf32>
    tpu.vector_store %arg11[%c0_5, %c0_6], %4 {strides = array<i32>} : memref<72x512xf32, #tpu.memory_space<vmem>>, vector<8x512xf32>,
    %c0_7 = arith.constant 0 : index
    %c0_8 = arith.constant 0 : index
    %c1 = arith.constant 1 : index
    %6 = vector.load %arg1[%c0_7, %c0_8, %c1] : memref<1x8x640xf32, #tpu.memory_space<vmem>>, vector<1x8x512xf32>
    %7 = vector.shape_cast %6 : vector<1x8x512xf32> to vector<8x512xf32>
    %c8 = arith.constant 8 : index
    %c0_9 = arith.constant 0 : index
    %8 = vector.load %arg11[%c8, %c0_9] : memref<72x512xf32, #tpu.memory_space<vmem>>, vector<8x512xf32>
    tpu.vector_store %arg11[%c8, %c0_9], %7 {strides = array<i32>} : memref<72x512xf32, #tpu.memory_space<vmem>>, vector<8x512xf32>,
    %c0_10 = arith.constant 0 : index
    %c0_11 = arith.constant 0 : index
    %c2 = arith.constant 2 : index
    %9 = vector.load %arg1[%c0_10, %c0_11, %c2] : memref<1x8x640xf32, #tpu.memory_space<vmem>>, vector<1x8x512xf32>
    %10 = vector.shape_cast %9 : vector<1x8x512xf32> to vector<8x512xf32>
    %c16 = arith.constant 16 : index
    %c0_12 = arith.constant 0 : index
    %11 = vector.load %arg11[%c16, %c0_12] : memref<72x512xf32, #tpu.memory_space<vmem>>, vector<8x512xf32>
    tpu.vector_store %arg11[%c16, %c0_12], %10 {strides = array<i32>} : memref<72x512xf32, #tpu.memory_space<vmem>>, vector<8x512xf32>,
    %c0_13 = arith.constant 0 : index
    %c0_14 = arith.constant 0 : index
    %c20 = arith.constant 20 : index
    %12 = vector.load %arg1[%c0_13, %c0_14, %c20] : memref<1x8x640xf32, #tpu.memory_space<vmem>>, vector<1x8x512xf32>
    %13 = vector.shape_cast %12 : vector<1x8x512xf32> to vector<8x512xf32>
    %c24 = arith.constant 24 : index
    %c0_15 = arith.constant 0 : index
    %14 = vector.load %arg11[%c24, %c0_15] : memref<72x512xf32, #tpu.memory_space<vmem>>, vector<8x512xf32>
    tpu.vector_store %arg11[%c24, %c0_15], %13 {strides = array<i32>} : memref<72x512xf32, #tpu.memory_space<vmem>>, vector<8x512xf32>,
    %c0_16 = arith.constant 0 : index
    %c0_17 = arith.constant 0 : index
    %c21 = arith.constant 21 : index
    %15 = vector.load %arg1[%c0_16, %c0_17, %c21] : memref<1x8x640xf32, #tpu.memory_space<vmem>>, vector<1x8x512xf32>
    %16 = vector.shape_cast %15 : vector<1x8x512xf32> to vector<8x512xf32>
    %c32 = arith.constant 32 : index
    %c0_18 = arith.constant 0 : index
    %17 = vector.load %arg11[%c32, %c0_18] : memref<72x512xf32, #tpu.memory_space<vmem>>, vector<8x512xf32>
    tpu.vector_store %arg11[%c32, %c0_18], %16 {strides = array<i32>} : memref<72x512xf32, #tpu.memory_space<vmem>>, vector<8x512xf32>,
    %c0_19 = arith.constant 0 : index
    %c0_20 = arith.constant 0 : index
    %c22 = arith.constant 22 : index
    %18 = vector.load %arg1[%c0_19, %c0_20, %c22] : memref<1x8x640xf32, #tpu.memory_space<vmem>>, vector<1x8x512xf32>
    %19 = vector.shape_cast %18 : vector<1x8x512xf32> to vector<8x512xf32>
    %c40 = arith.constant 40 : index
    %c0_21 = arith.constant 0 : index
    %20 = vector.load %arg11[%c40, %c0_21] : memref<72x512xf32, #tpu.memory_space<vmem>>, vector<8x512xf32>
    tpu.vector_store %arg11[%c40, %c0_21], %19 {strides = array<i32>} : memref<72x512xf32, #tpu.memory_space<vmem>>, vector<8x512xf32>,
    %c0_22 = arith.constant 0 : index
    %c0_23 = arith.constant 0 : index
    %c40_24 = arith.constant 40 : index
    %21 = vector.load %arg1[%c0_22, %c0_23, %c40_24] : memref<1x8x640xf32, #tpu.memory_space<vmem>>, vector<1x8x512xf32>
    %22 = vector.shape_cast %21 : vector<1x8x512xf32> to vector<8x512xf32>
    %c48 = arith.constant 48 : index
    %c0_25 = arith.constant 0 : index
    %23 = vector.load %arg11[%c48, %c0_25] : memref<72x512xf32, #tpu.memory_space<vmem>>, vector<8x512xf32>
    tpu.vector_store %arg11[%c48, %c0_25], %22 {strides = array<i32>} : memref<72x512xf32, #tpu.memory_space<vmem>>, vector<8x512xf32>,
    %c0_26 = arith.constant 0 : index
    %c0_27 = arith.constant 0 : index
    %c41 = arith.constant 41 : index
    %24 = vector.load %arg1[%c0_26, %c0_27, %c41] : memref<1x8x640xf32, #tpu.memory_space<vmem>>, vector<1x8x512xf32>
    %25 = vector.shape_cast %24 : vector<1x8x512xf32> to vector<8x512xf32>
    %c56 = arith.constant 56 : index
    %c0_28 = arith.constant 0 : index
    %26 = vector.load %arg11[%c56, %c0_28] : memref<72x512xf32, #tpu.memory_space<vmem>>, vector<8x512xf32>
    tpu.vector_store %arg11[%c56, %c0_28], %25 {strides = array<i32>} : memref<72x512xf32, #tpu.memory_space<vmem>>, vector<8x512xf32>,
    %c0_29 = arith.constant 0 : index
    %c0_30 = arith.constant 0 : index
    %c42 = arith.constant 42 : index
    %27 = vector.load %arg1[%c0_29, %c0_30, %c42] : memref<1x8x640xf32, #tpu.memory_space<vmem>>, vector<1x8x512xf32>
    %28 = vector.shape_cast %27 : vector<1x8x512xf32> to vector<8x512xf32>
    %c64 = arith.constant 64 : index
    %c0_31 = arith.constant 0 : index
    %29 = vector.load %arg11[%c64, %c0_31] : memref<72x512xf32, #tpu.memory_space<vmem>>, vector<8x512xf32>
    tpu.vector_store %arg11[%c64, %c0_31], %28 {strides = array<i32>} : memref<72x512xf32, #tpu.memory_space<vmem>>, vector<8x512xf32>,
    %c0_32 = arith.constant 0 : index
    %c0_33 = arith.constant 0 : index
    %30 = vector.load %arg11[%c0_32, %c0_33] : memref<72x512xf32, #tpu.memory_space<vmem>>, vector<72x512xf32>
    %c0_34 = arith.constant 0 : index
    %c0_35 = arith.constant 0 : index
    %31 = vector.load %arg2[%c0_34, %c0_35] : memref<8x72xf32, #tpu.memory_space<vmem>>, vector<8x72xf32>
    %cst_36 = arith.constant dense<0.000000e+00> : vector<8x512xf32>
    %32 = tpu.matmul %31, %30, %cst_36 {dimension_numbers = #tpu.dot_dimension_numbers<[1], [0], [0], [1], [0, 0, 1, 1], [], []>} : vector<8x72xf32>, vector<72x512xf32>, vector<8x512xf32> -> vector<8x512xf32>
    %c0_37 = arith.constant 0 : index
    %c0_38 = arith.constant 0 : index
    %33 = vector.load %arg3[%c0_37, %c0_38] : memref<8x1xf32, #tpu.memory_space<vmem>>, vector<8x1xf32>
    %34 = vector.broadcast %33 : vector<8x1xf32> to vector<8x512xf32>
    %35 = arith.addf %32, %34 : vector<8x512xf32>
    %cst_39 = arith.constant 0.000000e+00 : f32
    %36 = vector.broadcast %cst_39 : f32 to vector<8x512xf32>
    %37 = arith.maximumf %35, %36 : vector<8x512xf32>
    %38 = tpu.iota {dimensions = array<i32: 1>} : vector<1x512xi32>
    %false = arith.constant false
    %39 = vector.broadcast %false : i1 to vector<1x512xi1>
    %c21_i32 = arith.constant 21 : i32
    %40 = vector.broadcast %c21_i32 : i32 to vector<1x512xi32>
    %41 = arith.cmpi sge, %38, %40 : vector<1x512xi32>
    %c37_i32 = arith.constant 37 : i32
    %42 = vector.broadcast %c37_i32 : i32 to vector<1x512xi32>
    %43 = arith.cmpi slt, %38, %42 : vector<1x512xi32>
    %44 = arith.andi %41, %43 : vector<1x512xi1>
    %45 = arith.ori %39, %44 : vector<1x512xi1>
    %c41_i32 = arith.constant 41 : i32
    %46 = vector.broadcast %c41_i32 : i32 to vector<1x512xi32>
    %47 = arith.cmpi sge, %38, %46 : vector<1x512xi32>
    %c57_i32 = arith.constant 57 : i32
    %48 = vector.broadcast %c57_i32 : i32 to vector<1x512xi32>
    %49 = arith.cmpi slt, %38, %48 : vector<1x512xi32>
    %50 = arith.andi %47, %49 : vector<1x512xi1>
    %51 = arith.ori %45, %50 : vector<1x512xi1>
    %c61_i32 = arith.constant 61 : i32
    %52 = vector.broadcast %c61_i32 : i32 to vector<1x512xi32>
    %53 = arith.cmpi sge, %38, %52 : vector<1x512xi32>
    %c77_i32 = arith.constant 77 : i32
    %54 = vector.broadcast %c77_i32 : i32 to vector<1x512xi32>
    %55 = arith.cmpi slt, %38, %54 : vector<1x512xi32>
    %56 = arith.andi %53, %55 : vector<1x512xi1>
    %57 = arith.ori %51, %56 : vector<1x512xi1>
    %c81_i32 = arith.constant 81 : i32
    %58 = vector.broadcast %c81_i32 : i32 to vector<1x512xi32>
    %59 = arith.cmpi sge, %38, %58 : vector<1x512xi32>
    %c97_i32 = arith.constant 97 : i32
    %60 = vector.broadcast %c97_i32 : i32 to vector<1x512xi32>
    %61 = arith.cmpi slt, %38, %60 : vector<1x512xi32>
    %62 = arith.andi %59, %61 : vector<1x512xi1>
    %63 = arith.ori %57, %62 : vector<1x512xi1>
    %c101_i32 = arith.constant 101 : i32
    %64 = vector.broadcast %c101_i32 : i32 to vector<1x512xi32>
    %65 = arith.cmpi sge, %38, %64 : vector<1x512xi32>
    %c117_i32 = arith.constant 117 : i32
    %66 = vector.broadcast %c117_i32 : i32 to vector<1x512xi32>
    %67 = arith.cmpi slt, %38, %66 : vector<1x512xi32>
    %68 = arith.andi %65, %67 : vector<1x512xi1>
    %69 = arith.ori %63, %68 : vector<1x512xi1>
    %c121_i32 = arith.constant 121 : i32
    %70 = vector.broadcast %c121_i32 : i32 to vector<1x512xi32>
    %71 = arith.cmpi sge, %38, %70 : vector<1x512xi32>
    %c137_i32 = arith.constant 137 : i32
    %72 = vector.broadcast %c137_i32 : i32 to vector<1x512xi32>
    %73 = arith.cmpi slt, %38, %72 : vector<1x512xi32>
    %74 = arith.andi %71, %73 : vector<1x512xi1>
    %75 = arith.ori %69, %74 : vector<1x512xi1>
    %c141_i32 = arith.constant 141 : i32
    %76 = vector.broadcast %c141_i32 : i32 to vector<1x512xi32>
    %77 = arith.cmpi sge, %38, %76 : vector<1x512xi32>
    %c157_i32 = arith.constant 157 : i32
    %78 = vector.broadcast %c157_i32 : i32 to vector<1x512xi32>
    %79 = arith.cmpi slt, %38, %78 : vector<1x512xi32>
    %80 = arith.andi %77, %79 : vector<1x512xi1>
    %81 = arith.ori %75, %80 : vector<1x512xi1>
    %c161_i32 = arith.constant 161 : i32
    %82 = vector.broadcast %c161_i32 : i32 to vector<1x512xi32>
    %83 = arith.cmpi sge, %38, %82 : vector<1x512xi32>
    %c177_i32 = arith.constant 177 : i32
    %84 = vector.broadcast %c177_i32 : i32 to vector<1x512xi32>
    %85 = arith.cmpi slt, %38, %84 : vector<1x512xi32>
    %86 = arith.andi %83, %85 : vector<1x512xi1>
    %87 = arith.ori %81, %86 : vector<1x512xi1>
    %c181_i32 = arith.constant 181 : i32
    %88 = vector.broadcast %c181_i32 : i32 to vector<1x512xi32>
    %89 = arith.cmpi sge, %38, %88 : vector<1x512xi32>
    %c197_i32 = arith.constant 197 : i32
    %90 = vector.broadcast %c197_i32 : i32 to vector<1x512xi32>
    %91 = arith.cmpi slt, %38, %90 : vector<1x512xi32>
    %92 = arith.andi %89, %91 : vector<1x512xi1>
    %93 = arith.ori %87, %92 : vector<1x512xi1>
    %c201_i32 = arith.constant 201 : i32
    %94 = vector.broadcast %c201_i32 : i32 to vector<1x512xi32>
    %95 = arith.cmpi sge, %38, %94 : vector<1x512xi32>
    %c217_i32 = arith.constant 217 : i32
    %96 = vector.broadcast %c217_i32 : i32 to vector<1x512xi32>
    %97 = arith.cmpi slt, %38, %96 : vector<1x512xi32>
    %98 = arith.andi %95, %97 : vector<1x512xi1>
    %99 = arith.ori %93, %98 : vector<1x512xi1>
    %c221_i32 = arith.constant 221 : i32
    %100 = vector.broadcast %c221_i32 : i32 to vector<1x512xi32>
    %101 = arith.cmpi sge, %38, %100 : vector<1x512xi32>
    %c237_i32 = arith.constant 237 : i32
    %102 = vector.broadcast %c237_i32 : i32 to vector<1x512xi32>
    %103 = arith.cmpi slt, %38, %102 : vector<1x512xi32>
    %104 = arith.andi %101, %103 : vector<1x512xi1>
    %105 = arith.ori %99, %104 : vector<1x512xi1>
    %c241_i32 = arith.constant 241 : i32
    %106 = vector.broadcast %c241_i32 : i32 to vector<1x512xi32>
    %107 = arith.cmpi sge, %38, %106 : vector<1x512xi32>
    %c257_i32 = arith.constant 257 : i32
    %108 = vector.broadcast %c257_i32 : i32 to vector<1x512xi32>
    %109 = arith.cmpi slt, %38, %108 : vector<1x512xi32>
    %110 = arith.andi %107, %109 : vector<1x512xi1>
    %111 = arith.ori %105, %110 : vector<1x512xi1>
    %c261_i32 = arith.constant 261 : i32
    %112 = vector.broadcast %c261_i32 : i32 to vector<1x512xi32>
    %113 = arith.cmpi sge, %38, %112 : vector<1x512xi32>
    %c277_i32 = arith.constant 277 : i32
    %114 = vector.broadcast %c277_i32 : i32 to vector<1x512xi32>
    %115 = arith.cmpi slt, %38, %114 : vector<1x512xi32>
    %116 = arith.andi %113, %115 : vector<1x512xi1>
    %117 = arith.ori %111, %116 : vector<1x512xi1>
    %c281_i32 = arith.constant 281 : i32
    %118 = vector.broadcast %c281_i32 : i32 to vector<1x512xi32>
    %119 = arith.cmpi sge, %38, %118 : vector<1x512xi32>
    %c297_i32 = arith.constant 297 : i32
    %120 = vector.broadcast %c297_i32 : i32 to vector<1x512xi32>
    %121 = arith.cmpi slt, %38, %120 : vector<1x512xi32>
    %122 = arith.andi %119, %121 : vector<1x512xi1>
    %123 = arith.ori %117, %122 : vector<1x512xi1>
    %c301_i32 = arith.constant 301 : i32
    %124 = vector.broadcast %c301_i32 : i32 to vector<1x512xi32>
    %125 = arith.cmpi sge, %38, %124 : vector<1x512xi32>
    %c317_i32 = arith.constant 317 : i32
    %126 = vector.broadcast %c317_i32 : i32 to vector<1x512xi32>
    %127 = arith.cmpi slt, %38, %126 : vector<1x512xi32>
    %128 = arith.andi %125, %127 : vector<1x512xi1>
    %129 = arith.ori %123, %128 : vector<1x512xi1>
    %c321_i32 = arith.constant 321 : i32
    %130 = vector.broadcast %c321_i32 : i32 to vector<1x512xi32>
    %131 = arith.cmpi sge, %38, %130 : vector<1x512xi32>
    %c337_i32 = arith.constant 337 : i32
    %132 = vector.broadcast %c337_i32 : i32 to vector<1x512xi32>
    %133 = arith.cmpi slt, %38, %132 : vector<1x512xi32>
    %134 = arith.andi %131, %133 : vector<1x512xi1>
    %135 = arith.ori %129, %134 : vector<1x512xi1>
    %cst_40 = arith.constant 0.000000e+00 : f32
    %136 = vector.shape_cast %135 : vector<1x512xi1> to vector<1x512xi1>
    %137 = vector.broadcast %136 : vector<1x512xi1> to vector<8x512xi1>
    %138 = vector.broadcast %cst_40 : f32 to vector<8x512xf32>
    %139 = arith.select %137, %37, %138 : vector<8x512xi1>, vector<8x512xf32>
    %c0_41 = arith.constant 0 : index
    %c0_42 = arith.constant 0 : index
    %140 = vector.load %arg12[%c0_41, %c0_42] : memref<8x640xf32, #tpu.memory_space<vmem>>, vector<8x512xf32>
    tpu.vector_store %arg12[%c0_41, %c0_42], %139 {strides = array<i32>} : memref<8x640xf32, #tpu.memory_space<vmem>>, vector<8x512xf32>,
    %c0_43 = arith.constant 0 : index
    %c0_44 = arith.constant 0 : index
    %141 = vector.load %arg12[%c0_43, %c0_44] : memref<8x640xf32, #tpu.memory_space<vmem>>, vector<8x512xf32>
    %c0_45 = arith.constant 0 : index
    %c0_46 = arith.constant 0 : index
    %142 = vector.load %arg11[%c0_45, %c0_46] : memref<72x512xf32, #tpu.memory_space<vmem>>, vector<8x512xf32>
    tpu.vector_store %arg11[%c0_45, %c0_46], %141 {strides = array<i32>} : memref<72x512xf32, #tpu.memory_space<vmem>>, vector<8x512xf32>,
    %c0_47 = arith.constant 0 : index
    %c1_48 = arith.constant 1 : index
    %143 = vector.load %arg12[%c0_47, %c1_48] : memref<8x640xf32, #tpu.memory_space<vmem>>, vector<8x512xf32>
    %c8_49 = arith.constant 8 : index
    %c0_50 = arith.constant 0 : index
    %144 = vector.load %arg11[%c8_49, %c0_50] : memref<72x512xf32, #tpu.memory_space<vmem>>, vector<8x512xf32>
    tpu.vector_store %arg11[%c8_49, %c0_50], %143 {strides = array<i32>} : memref<72x512xf32, #tpu.memory_space<vmem>>, vector<8x512xf32>,
    %c0_51 = arith.constant 0 : index
    %c2_52 = arith.constant 2 : index
    %145 = vector.load %arg12[%c0_51, %c2_52] : memref<8x640xf32, #tpu.memory_space<vmem>>, vector<8x512xf32>
    %c16_53 = arith.constant 16 : index
    %c0_54 = arith.constant 0 : index
    %146 = vector.load %arg11[%c16_53, %c0_54] : memref<72x512xf32, #tpu.memory_space<vmem>>, vector<8x512xf32>
    tpu.vector_store %arg11[%c16_53, %c0_54], %145 {strides = array<i32>} : memref<72x512xf32, #tpu.memory_space<vmem>>, vector<8x512xf32>,
    %c0_55 = arith.constant 0 : index
    %c20_56 = arith.constant 20 : index
    %147 = vector.load %arg12[%c0_55, %c20_56] : memref<8x640xf32, #tpu.memory_space<vmem>>, vector<8x512xf32>
    %c24_57 = arith.constant 24 : index
    %c0_58 = arith.constant 0 : index
    %148 = vector.load %arg11[%c24_57, %c0_58] : memref<72x512xf32, #tpu.memory_space<vmem>>, vector<8x512xf32>
    tpu.vector_store %arg11[%c24_57, %c0_58], %147 {strides = array<i32>} : memref<72x512xf32, #tpu.memory_space<vmem>>, vector<8x512xf32>,
    %c0_59 = arith.constant 0 : index
    %c21_60 = arith.constant 21 : index
    %149 = vector.load %arg12[%c0_59, %c21_60] : memref<8x640xf32, #tpu.memory_space<vmem>>, vector<8x512xf32>
    %c32_61 = arith.constant 32 : index
    %c0_62 = arith.constant 0 : index
    %150 = vector.load %arg11[%c32_61, %c0_62] : memref<72x512xf32, #tpu.memory_space<vmem>>, vector<8x512xf32>
    tpu.vector_store %arg11[%c32_61, %c0_62], %149 {strides = array<i32>} : memref<72x512xf32, #tpu.memory_space<vmem>>, vector<8x512xf32>,
    %c0_63 = arith.constant 0 : index
    %c22_64 = arith.constant 22 : index
    %151 = vector.load %arg12[%c0_63, %c22_64] : memref<8x640xf32, #tpu.memory_space<vmem>>, vector<8x512xf32>
    %c40_65 = arith.constant 40 : index
    %c0_66 = arith.constant 0 : index
    %152 = vector.load %arg11[%c40_65, %c0_66] : memref<72x512xf32, #tpu.memory_space<vmem>>, vector<8x512xf32>
    tpu.vector_store %arg11[%c40_65, %c0_66], %151 {strides = array<i32>} : memref<72x512xf32, #tpu.memory_space<vmem>>, vector<8x512xf32>,
    %c0_67 = arith.constant 0 : index
    %c40_68 = arith.constant 40 : index
    %153 = vector.load %arg12[%c0_67, %c40_68] : memref<8x640xf32, #tpu.memory_space<vmem>>, vector<8x512xf32>
    %c48_69 = arith.constant 48 : index
    %c0_70 = arith.constant 0 : index
    %154 = vector.load %arg11[%c48_69, %c0_70] : memref<72x512xf32, #tpu.memory_space<vmem>>, vector<8x512xf32>
    tpu.vector_store %arg11[%c48_69, %c0_70], %153 {strides = array<i32>} : memref<72x512xf32, #tpu.memory_space<vmem>>, vector<8x512xf32>,
    %c0_71 = arith.constant 0 : index
    %c41_72 = arith.constant 41 : index
    %155 = vector.load %arg12[%c0_71, %c41_72] : memref<8x640xf32, #tpu.memory_space<vmem>>, vector<8x512xf32>
    %c56_73 = arith.constant 56 : index
    %c0_74 = arith.constant 0 : index
    %156 = vector.load %arg11[%c56_73, %c0_74] : memref<72x512xf32, #tpu.memory_space<vmem>>, vector<8x512xf32>
    tpu.vector_store %arg11[%c56_73, %c0_74], %155 {strides = array<i32>} : memref<72x512xf32, #tpu.memory_space<vmem>>, vector<8x512xf32>,
    %c0_75 = arith.constant 0 : index
    %c42_76 = arith.constant 42 : index
    %157 = vector.load %arg12[%c0_75, %c42_76] : memref<8x640xf32, #tpu.memory_space<vmem>>, vector<8x512xf32>
    %c64_77 = arith.constant 64 : index
    %c0_78 = arith.constant 0 : index
    %158 = vector.load %arg11[%c64_77, %c0_78] : memref<72x512xf32, #tpu.memory_space<vmem>>, vector<8x512xf32>
    tpu.vector_store %arg11[%c64_77, %c0_78], %157 {strides = array<i32>} : memref<72x512xf32, #tpu.memory_space<vmem>>, vector<8x512xf32>,
    %c0_79 = arith.constant 0 : index
    %c0_80 = arith.constant 0 : index
    %159 = vector.load %arg11[%c0_79, %c0_80] : memref<72x512xf32, #tpu.memory_space<vmem>>, vector<72x512xf32>
    %c0_81 = arith.constant 0 : index
    %c0_82 = arith.constant 0 : index
    %160 = vector.load %arg4[%c0_81, %c0_82] : memref<8x72xf32, #tpu.memory_space<vmem>>, vector<8x72xf32>
    %cst_83 = arith.constant dense<0.000000e+00> : vector<8x512xf32>
    %161 = tpu.matmul %160, %159, %cst_83 {dimension_numbers = #tpu.dot_dimension_numbers<[1], [0], [0], [1], [0, 0, 1, 1], [], []>} : vector<8x72xf32>, vector<72x512xf32>, vector<8x512xf32> -> vector<8x512xf32>
    %c0_84 = arith.constant 0 : index
    %c0_85 = arith.constant 0 : index
    %162 = vector.load %arg5[%c0_84, %c0_85] : memref<8x1xf32, #tpu.memory_space<vmem>>, vector<8x1xf32>
    %163 = vector.broadcast %162 : vector<8x1xf32> to vector<8x512xf32>
    %164 = arith.addf %161, %163 : vector<8x512xf32>
    %cst_86 = arith.constant 0.000000e+00 : f32
    %165 = vector.broadcast %cst_86 : f32 to vector<8x512xf32>
    %166 = arith.maximumf %164, %165 : vector<8x512xf32>
    %c0_87 = arith.constant 0 : index
    %c0_88 = arith.constant 0 : index
    %167 = vector.load %arg13[%c0_87, %c0_88] : memref<8x640xf32, #tpu.memory_space<vmem>>, vector<8x512xf32>
    tpu.vector_store %arg13[%c0_87, %c0_88], %166 {strides = array<i32>} : memref<8x640xf32, #tpu.memory_space<vmem>>, vector<8x512xf32>,
    %c0_89 = arith.constant 0 : index
    %c0_90 = arith.constant 0 : index
    %168 = vector.load %arg13[%c0_89, %c0_90] : memref<8x640xf32, #tpu.memory_space<vmem>>, vector<8x512xf32>
    %c0_91 = arith.constant 0 : index
    %c0_92 = arith.constant 0 : index
    %169 = vector.load %arg11[%c0_91, %c0_92] : memref<72x512xf32, #tpu.memory_space<vmem>>, vector<8x512xf32>
    tpu.vector_store %arg11[%c0_91, %c0_92], %168 {strides = array<i32>} : memref<72x512xf32, #tpu.memory_space<vmem>>, vector<8x512xf32>,
    %c0_93 = arith.constant 0 : index
    %c1_94 = arith.constant 1 : index
    %170 = vector.load %arg13[%c0_93, %c1_94] : memref<8x640xf32, #tpu.memory_space<vmem>>, vector<8x512xf32>
    %c8_95 = arith.constant 8 : index
    %c0_96 = arith.constant 0 : index
    %171 = vector.load %arg11[%c8_95, %c0_96] : memref<72x512xf32, #tpu.memory_space<vmem>>, vector<8x512xf32>
    tpu.vector_store %arg11[%c8_95, %c0_96], %170 {strides = array<i32>} : memref<72x512xf32, #tpu.memory_space<vmem>>, vector<8x512xf32>,
    %c0_97 = arith.constant 0 : index
    %c20_98 = arith.constant 20 : index
    %172 = vector.load %arg13[%c0_97, %c20_98] : memref<8x640xf32, #tpu.memory_space<vmem>>, vector<8x512xf32>
    %c16_99 = arith.constant 16 : index
    %c0_100 = arith.constant 0 : index
    %173 = vector.load %arg11[%c16_99, %c0_100] : memref<72x512xf32, #tpu.memory_space<vmem>>, vector<8x512xf32>
    tpu.vector_store %arg11[%c16_99, %c0_100], %172 {strides = array<i32>} : memref<72x512xf32, #tpu.memory_space<vmem>>, vector<8x512xf32>,
    %c0_101 = arith.constant 0 : index
    %c21_102 = arith.constant 21 : index
    %174 = vector.load %arg13[%c0_101, %c21_102] : memref<8x640xf32, #tpu.memory_space<vmem>>, vector<8x512xf32>
    %c24_103 = arith.constant 24 : index
    %c0_104 = arith.constant 0 : index
    %175 = vector.load %arg11[%c24_103, %c0_104] : memref<72x512xf32, #tpu.memory_space<vmem>>, vector<8x512xf32>
    tpu.vector_store %arg11[%c24_103, %c0_104], %174 {strides = array<i32>} : memref<72x512xf32, #tpu.memory_space<vmem>>, vector<8x512xf32>,
    %c0_105 = arith.constant 0 : index
    %c0_106 = arith.constant 0 : index
    %176 = vector.load %arg11[%c0_105, %c0_106] : memref<72x512xf32, #tpu.memory_space<vmem>>, vector<32x512xf32>
    %c0_107 = arith.constant 0 : index
    %c0_108 = arith.constant 0 : index
    %177 = vector.load %arg6[%c0_107, %c0_108] : memref<8x32xf32, #tpu.memory_space<vmem>>, vector<8x32xf32>
    %cst_109 = arith.constant dense<0.000000e+00> : vector<8x512xf32>
    %178 = tpu.matmul %177, %176, %cst_109 {dimension_numbers = #tpu.dot_dimension_numbers<[1], [0], [0], [1], [0, 0, 1, 1], [], []>} : vector<8x32xf32>, vector<32x512xf32>, vector<8x512xf32> -> vector<8x512xf32>
    %c0_110 = arith.constant 0 : index
    %c0_111 = arith.constant 0 : index
    %179 = vector.load %arg7[%c0_110, %c0_111] : memref<8x1xf32, #tpu.memory_space<vmem>>, vector<8x1xf32>
    %180 = vector.broadcast %179 : vector<8x1xf32> to vector<8x512xf32>
    %181 = arith.addf %178, %180 : vector<8x512xf32>
    %cst_112 = arith.constant 0.000000e+00 : f32
    %182 = vector.broadcast %cst_112 : f32 to vector<8x512xf32>
    %183 = arith.maximumf %181, %182 : vector<8x512xf32>
    %c0_113 = arith.constant 0 : index
    %c0_114 = arith.constant 0 : index
    %184 = vector.load %arg12[%c0_113, %c0_114] : memref<8x640xf32, #tpu.memory_space<vmem>>, vector<8x512xf32>
    tpu.vector_store %arg12[%c0_113, %c0_114], %183 {strides = array<i32>} : memref<8x640xf32, #tpu.memory_space<vmem>>, vector<8x512xf32>,
    %c0_115 = arith.constant 0 : index
    %c0_116 = arith.constant 0 : index
    %185 = vector.load %arg12[%c0_115, %c0_116] : memref<8x640xf32, #tpu.memory_space<vmem>>, vector<8x512xf32>
    %c0_117 = arith.constant 0 : index
    %c0_118 = arith.constant 0 : index
    %186 = vector.load %arg11[%c0_117, %c0_118] : memref<72x512xf32, #tpu.memory_space<vmem>>, vector<8x512xf32>
    tpu.vector_store %arg11[%c0_117, %c0_118], %185 {strides = array<i32>} : memref<72x512xf32, #tpu.memory_space<vmem>>, vector<8x512xf32>,
    %c0_119 = arith.constant 0 : index
    %c1_120 = arith.constant 1 : index
    %187 = vector.load %arg12[%c0_119, %c1_120] : memref<8x640xf32, #tpu.memory_space<vmem>>, vector<8x512xf32>
    %c8_121 = arith.constant 8 : index
    %c0_122 = arith.constant 0 : index
    %188 = vector.load %arg11[%c8_121, %c0_122] : memref<72x512xf32, #tpu.memory_space<vmem>>, vector<8x512xf32>
    tpu.vector_store %arg11[%c8_121, %c0_122], %187 {strides = array<i32>} : memref<72x512xf32, #tpu.memory_space<vmem>>, vector<8x512xf32>,
    %c0_123 = arith.constant 0 : index
    %c20_124 = arith.constant 20 : index
    %189 = vector.load %arg12[%c0_123, %c20_124] : memref<8x640xf32, #tpu.memory_space<vmem>>, vector<8x512xf32>
    %c16_125 = arith.constant 16 : index
    %c0_126 = arith.constant 0 : index
    %190 = vector.load %arg11[%c16_125, %c0_126] : memref<72x512xf32, #tpu.memory_space<vmem>>, vector<8x512xf32>
    tpu.vector_store %arg11[%c16_125, %c0_126], %189 {strides = array<i32>} : memref<72x512xf32, #tpu.memory_space<vmem>>, vector<8x512xf32>,
    %c0_127 = arith.constant 0 : index
    %c21_128 = arith.constant 21 : index
    %191 = vector.load %arg12[%c0_127, %c21_128] : memref<8x640xf32, #tpu.memory_space<vmem>>, vector<8x512xf32>
    %c24_129 = arith.constant 24 : index
    %c0_130 = arith.constant 0 : index
    %192 = vector.load %arg11[%c24_129, %c0_130] : memref<72x512xf32, #tpu.memory_space<vmem>>, vector<8x512xf32>
    tpu.vector_store %arg11[%c24_129, %c0_130], %191 {strides = array<i32>} : memref<72x512xf32, #tpu.memory_space<vmem>>, vector<8x512xf32>,
    %c0_131 = arith.constant 0 : index
    %c0_132 = arith.constant 0 : index
    %193 = vector.load %arg11[%c0_131, %c0_132] : memref<72x512xf32, #tpu.memory_space<vmem>>, vector<32x512xf32>
    %c0_133 = arith.constant 0 : index
    %c0_134 = arith.constant 0 : index
    %194 = vector.load %arg8[%c0_133, %c0_134] : memref<16x32xf32, #tpu.memory_space<vmem>>, vector<16x32xf32>
    %cst_135 = arith.constant dense<0.000000e+00> : vector<16x512xf32>
    %195 = tpu.matmul %194, %193, %cst_135 {dimension_numbers = #tpu.dot_dimension_numbers<[1], [0], [0], [1], [0, 0, 1, 1], [], []>} : vector<16x32xf32>, vector<32x512xf32>, vector<16x512xf32> -> vector<16x512xf32>
    %c0_136 = arith.constant 0 : index
    %c0_137 = arith.constant 0 : index
    %196 = vector.load %arg9[%c0_136, %c0_137] : memref<16x1xf32, #tpu.memory_space<vmem>>, vector<16x1xf32>
    %197 = vector.broadcast %196 : vector<16x1xf32> to vector<16x512xf32>
    %198 = arith.addf %195, %197 : vector<16x512xf32>
    %cst_138 = arith.constant 0.000000e+00 : f32
    %199 = vector.broadcast %cst_138 : f32 to vector<16x512xf32>
    %200 = arith.maximumf %198, %199 : vector<16x512xf32>
    %c0_139 = arith.constant 0 : index
    %c0_140 = arith.constant 0 : index
    %c0_141 = arith.constant 0 : index
    %201 = vector.load %arg10[%c0_139, %c0_140, %c0_141] : memref<1x16x512xf32, #tpu.memory_space<vmem>>, vector<1x16x512xf32>
    %202 = vector.shape_cast %201 : vector<1x16x512xf32> to vector<16x512xf32>
    %203 = vector.shape_cast %200 : vector<16x512xf32> to vector<1x16x512xf32>
    tpu.vector_store %arg10[%c0_139, %c0_140, %c0_141], %203 {strides = array<i32>} : memref<1x16x512xf32, #tpu.memory_space<vmem>>, vector<1x16x512xf32>,
    return
  }
  func.func @transform_0(%arg0: i32) -> (i32, i32, i32) {
    %c0_i32 = arith.constant 0 : i32
    %c0_i32_0 = arith.constant 0 : i32
    %c0_i32_1 = arith.constant 0 : i32
    return %arg0, %c0_i32, %c0_i32_0 : i32, i32, i32
  }
  func.func @transform_1(%arg0: i32) -> (i32, i32) {
    %c0_i32 = arith.constant 0 : i32
    %c0_i32_0 = arith.constant 0 : i32
    %c0_i32_1 = arith.constant 0 : i32
    return %c0_i32, %c0_i32_0 : i32, i32
  }
  func.func @transform_2(%arg0: i32) -> (i32, i32) {
    %c0_i32 = arith.constant 0 : i32
    %c0_i32_0 = arith.constant 0 : i32
    %c0_i32_1 = arith.constant 0 : i32
    return %c0_i32, %c0_i32_0 : i32, i32
  }
  func.func @transform_3(%arg0: i32) -> (i32, i32) {
    %c0_i32 = arith.constant 0 : i32
    %c0_i32_0 = arith.constant 0 : i32
    %c0_i32_1 = arith.constant 0 : i32
    return %c0_i32, %c0_i32_0 : i32, i32
  }
  func.func @transform_4(%arg0: i32) -> (i32, i32) {
    %c0_i32 = arith.constant 0 : i32
    %c0_i32_0 = arith.constant 0 : i32
    %c0_i32_1 = arith.constant 0 : i32
    return %c0_i32, %c0_i32_0 : i32, i32
  }
  func.func @transform_5(%arg0: i32) -> (i32, i32) {
    %c0_i32 = arith.constant 0 : i32
    %c0_i32_0 = arith.constant 0 : i32
    %c0_i32_1 = arith.constant 0 : i32
    return %c0_i32, %c0_i32_0 : i32, i32
  }
  func.func @transform_6(%arg0: i32) -> (i32, i32) {
    %c0_i32 = arith.constant 0 : i32
    %c0_i32_0 = arith.constant 0 : i32
    %c0_i32_1 = arith.constant 0 : i32
    return %c0_i32, %c0_i32_0 : i32, i32
  }
  func.func @transform_7(%arg0: i32) -> (i32, i32) {
    %c0_i32 = arith.constant 0 : i32
    %c0_i32_0 = arith.constant 0 : i32
    %c0_i32_1 = arith.constant 0 : i32
    return %c0_i32, %c0_i32_0 : i32, i32
  }
  func.func @transform_8(%arg0: i32) -> (i32, i32) {
    %c0_i32 = arith.constant 0 : i32
    %c0_i32_0 = arith.constant 0 : i32
    %c0_i32_1 = arith.constant 0 : i32
    return %c0_i32, %c0_i32_0 : i32, i32
  }
  func.func @transform_9(%arg0: i32) -> (i32, i32, i32) {
    %c0_i32 = arith.constant 0 : i32
    %c0_i32_0 = arith.constant 0 : i32
    %c0_i32_1 = arith.constant 0 : i32
    return %arg0, %c0_i32, %c0_i32_0 : i32, i32, i32
  }
}

</mosaic_0001>

<bundles_post_ra>
// kernel: encoder_forward.1
= control target key start
LH: loop header
LB: loop body
LE: loop exit
PB: predicated region body
PF: predicated region fallthrough
CT: control target
= control target key end

     0   :  { %s2598_s30 = smov 0   ;;  %s2978_s0 = inlined_call_operand.vmem [shape: f32[2,8,640], index: 0, kind: input, shape index: {}]   ;;  %s2979_s1 = inlined_call_operand.vmem [shape: f32[8,72], index: 1, kind: input, shape index: {}]   ;;  %s2980_s2 = inlined_call_operand.vmem [shape: f32[8,1], index: 2, kind: input, shape index: {}]   ;;  %s2981_s3 = inlined_call_operand.vmem [shape: f32[8,72], index: 3, kind: input, shape index: {}]   ;;  %s2982_s4 = inlined_call_operand.vmem [shape: f32[8,1], index: 4, kind: input, shape index: {}]   ;;  %s2983_s5 = inlined_call_operand.vmem [shape: f32[8,32], index: 5, kind: input, shape index: {}]   ;;  %s2984_s6 = inlined_call_operand.vmem [shape: f32[8,1], index: 6, kind: input, shape index: {}]   ;;  %s2985_s7 = inlined_call_operand.vmem [shape: f32[16,32], index: 7, kind: input, shape index: {}]   ;;  %s2986_s8 = inlined_call_operand.vmem [shape: f32[16,1], index: 8, kind: input, shape index: {}]   ;;  %s2987_s9 = inlined_call_operand.vmem [shape: f32[2,16,512], index: 9, kind: output, shape index: {}]  }
   0x1 LB: > { %s2179_s10 = sadd.s32 4294967295, %s2535_s30   ;;  %p2183_p0 = scmp.ge.s32.totalorder %s2535_s30, 1  ;;  %s2535_s30 = sphi %s2598_s30, %s19_s30  }
   0x2   : > { %p287_p1 = scmp.lt.s32.totalorder %s2535_s30, 3 }
   0x4   : > { %p288_p2 = pnand %p2183_p0, %p287_p1 }
   0x5   : > { %p323_p3 = scmp.lt.s32.totalorder (!%p288_p2), %s2179_s10, 1  ;;  %s2537_s15 = smov (!%p288_p2), 127   ;;  %v2544_v7 = vmov (!%p288_p2), 0.0   ;;  %v2546_v8 = vmov (!%p288_p2), 0   ;;  %v644_v9 = vld [vmem:[%s2980_s2] sm:$0xff] (!%p288_p2)  ;;  %vm2996_vm0 = vcmask (!%p288_p2), 1039360  }
   0x6   : > { %291 = sbr.rel (%p288_p2) target bundleno = 1496 (0x5d8), region = 56  ;;  %s2538_s16 = smov (!%p288_p2), 126   ;;  %718 = vmatprep.mubr.f32.mxu0 (!%p288_p2), %v2544_v7  ;;  %789 = vmatprep.mubr.f32.mxu1 (!%p288_p2), %v2544_v7  ;;  %vm2995_vm1 = vcmask (!%p288_p2), 1031168   ;;  %vm2994_vm2 = vcmask (!%p288_p2), 883712   ;;  %vm2993_vm3 = vcmask (!%p288_p2), 875520   ;;  %vm2992_vm4 = vcmask (!%p288_p2), 867328  }
   0x7   : > { %s2539_s17 = smov (!%p288_p2), 108   ;;  %s2540_s18 = smov (!%p288_p2), 107   ;;  %2392 = vset.pattern.permute.xlu0 (!%p288_p2), %v2546_v8  ;;  %2468 = vset.pattern.permute.xlu1 (!%p288_p2), %v2546_v8  ;;  %vm2991_vm5 = vcmask (!%p288_p2), 719872   ;;  %vm2989_vm6 = vcmask (!%p288_p2), 711680   ;;  %vm2988_vm7 = vcmask (!%p288_p2), 703488   ;;  %vm2990_vm8 = vcmask (!%p288_p2), 588800  }
   0x8   : > { %s2541_s19 = smov (!%p288_p2), 106   ;;  %s2542_s20 = smov (!%p288_p2), 88  }
   0x9   : > { %s2543_s21 = smov (!%p288_p2), 87   ;;  %s2545_s22 = smov (!%p288_p2), 86  }
   0xd   : > { %s3074_s10 = smov (!%p323_p3, %s2179_s10), 1 }
   0xe   : > { %s2302_s11 = smul.u32 40, %s3074_s10  ;;  %s2199_s24 = sshll.u32 %s3074_s10, 6 }
   0xf   : > { %s332_s27 = scalar_lea.vmem %s2987_s9, %s2199_s24 }
  0x10   : > { %s327_s14 = scalar_lea.vmem %s2978_s0, %s2302_s11 }
  0x11   : > { %v347_v0 = vld [vmem:[%s327_s14 + $0x20] sm:$0xff]  ;;  %v2612_v1 = vld [vmem:[%s327_s14 + $0x8] sm:$0xff]  ;;  %v2614_v2 = vld [vmem:[%s327_s14 + $0x10] sm:$0xff] }
  0x12   : > { %361 = vrot.lane.b32.xlu1 %v347_v0, %s2537_s15  ;;  %v2322_v3 = vpack.i.bf16 %v2614_v2, %v2612_v1  ;;  %v2619_v4 = vld [vmem:[%s327_s14] sm:$0xff]  ;;  %v2621_v5 = vld [vmem:[%s327_s14 + $0x18] sm:$0xff] }
  0x13   : > { %v2327_v6 = vpack.i.bf16 %v2621_v5, %v2619_v4 }
  0x14   : > { %2323 = vrot.lane.b32.xlu0 %v2322_v3, %s2537_s15 }
  0x16   : > { %2333 = vrot.lane.b32.xlu1 %v2322_v3, %s2538_s16 }
  0x18   : > { %2328 = vrot.lane.b32.xlu0 %v2327_v6, %s2537_s15 }
  0x1a   : > { %2343 = vrot.lane.b32.xlu1 %v2327_v6, %s2538_s16 }
  0x1c   : > { %2338 = vrot.lane.b32.xlu0 %v2322_v3, %s2539_s17 }
  0x1e   : > { %2348 = vrot.lane.b32.xlu1 %v2327_v6, %s2539_s17 }
  0x20   : > { %394 = vrot.lane.b32.xlu0 %v347_v0, %s2538_s16 }
  0x22   : > { %2353 = vrot.lane.b32.xlu1 %v2322_v3, %s2540_s18 }
  0x24   : > { %427 = vrot.lane.b32.xlu0 %v347_v0, %s2539_s17 }
  0x26   : > { %2363 = vrot.lane.b32.xlu1 %v2327_v6, %s2540_s18 }
  0x28   : > { %2358 = vrot.lane.b32.xlu0 %v2322_v3, %s2541_s19 }
  0x2a   : > { %2368 = vrot.lane.b32.xlu1 %v2327_v6, %s2541_s19 }
  0x2c   : > { %460 = vrot.lane.b32.xlu0 %v347_v0, %s2540_s18 }
  0x2e   : > { %2373 = vrot.lane.b32.xlu1 %v2322_v3, %s2542_s20 }
  0x30   : > { %493 = vrot.lane.b32.xlu0 %v347_v0, %s2541_s19 }
  0x32   : > { %2383 = vrot.lane.b32.xlu1 %v2327_v6, %s2542_s20 }
  0x34   : > { %2378 = vrot.lane.b32.xlu0 %v2322_v3, %s2543_s21 }
  0x36   : > { %2388 = vrot.lane.b32.xlu1 %v2327_v6, %s2543_s21 }
  0x38   : > { %526 = vrot.lane.b32.xlu0 %v347_v0, %s2542_s20 }
  0x3a   : > { %586 = vrot.lane.b32.xlu1 %v2612_v1, %s2545_s22 }
  0x3c   : > { %559 = vrot.lane.b32.xlu0 %v347_v0, %s2543_s21 }
  0x3e   : > { %584 = vrot.lane.b32.xlu1 %v2619_v4, %s2545_s22 }
  0x40   : > { %588 = vrot.lane.b32.xlu0 %v2614_v2, %s2545_s22 }
  0x42   : > { %592 = vrot.lane.b32.xlu1 %v347_v0, %s2545_s22 }
  0x44   : > { %590 = vrot.lane.b32.xlu0 %v2621_v5, %s2545_s22 }
  0x46   : > { %2394 = vrot.lane.b32.xlu1 %v2544_v7, %s2537_s15 }
  0x48   : > { %647 = vperm.xlu0 %2392, %v644_v9  }
  0x4c   : > { %2399 = vrot.lane.b32.xlu0 %v2544_v7, %s2538_s16 }
  0x50   : > { %2404 = vrot.lane.b32.xlu0 %v2544_v7, %s2539_s17 }
  0x54   : > { %2409 = vrot.lane.b32.xlu0 %v2544_v7, %s2540_s18 }
  0x58   : > { %2414 = vrot.lane.b32.xlu0 %v2544_v7, %s2541_s19 }
  0x5c   : > { %2419 = vrot.lane.b32.xlu0 %v2544_v7, %s2542_s20 }
  0x60   : > { %2424 = vrot.lane.b32.xlu0 %v2544_v7, %s2543_s21 }
  0x84   : > { %v362_v10 = vpop.permute.xlu1 %361 }
  0x86   : > { %v2324_v11 = vpop.permute.xlu0 %2323 }
  0x87   : > { %v2326_v12 = vunpack.i.h.bf16 %v2324_v11  ;;  %v2325_v13 = vunpack.i.l.bf16 %v2324_v11 }
  0x88   : > { %v2334_v14 = vpop.permute.xlu1 %2333 }
  0x89   : > { %v365_v15 = vsel %vm2996_vm0, %v2325_v13, %v2326_v12  ;;  %v2336_v21 = vunpack.i.h.bf16 %v2334_v14  ;;  %v2335_v22 = vunpack.i.l.bf16 %v2334_v14 }
  0x8a   : > { %v2329_v16 = vpop.permute.xlu0 %2328  ;;  %v2203_v17 = vpack.c.bf16 %v365_v15, %v2612_v1 }
  0x8b   : > { %v2331_v18 = vunpack.i.h.bf16 %v2329_v16  ;;  %v2330_v19 = vunpack.i.l.bf16 %v2329_v16  ;;  %v398_v35 = vsel %vm2995_vm1, %v2335_v22, %v2336_v21 }
  0x8c   : > { %v2344_v20 = vpop.permute.xlu1 %2343  ;;  %2204 = vmatprep.subr.bf16.mxu0 %v2203_v17 }
  0x8d   : > { %v364_v23 = vsel %vm2996_vm0, %v2330_v19, %v2325_v13  ;;  %v367_v24 = vsel %vm2996_vm0, %v2331_v18, %v362_v10  ;;  %v366_v28 = vsel %vm2996_vm0, %v2326_v12, %v2331_v18  ;;  %v2345_v29 = vunpack.i.l.bf16 %v2344_v20 }
  0x8e   : > { %v2339_v25 = vpop.permute.xlu0 %2338  ;;  %v2205_v26 = vpack.c.bf16 %v364_v23, %v2619_v4  ;;  %v2219_v27 = vpack.c.bf16 %v367_v24, %v2621_v5  ;;  %v2221_v32 = vpack.c.bf16 %v366_v28, %v2614_v2  ;;  %v2346_v42 = vunpack.i.h.bf16 %v2344_v20 }
  0x8f   : > { %v2341_v30 = vunpack.i.h.bf16 %v2339_v25  ;;  %v2340_v31 = vunpack.i.l.bf16 %v2339_v25  ;;  %v397_v40 = vsel %vm2995_vm1, %v2345_v29, %v2335_v22 }
  0x90   : > { %v2349_v33 = vpop.permute.xlu1 %2348  ;;  %2206 = vmatpush1.bf16.msra.mxu0 %v2205_v26  ;;  %2220 = vmatprep.subr.bf16.mxu1 %v2219_v27  ;;  %v399_v51 = vsel %vm2995_vm1, %v2336_v21, %v2346_v42 }
  0x91   : > { %v2350_v34 = vunpack.i.l.bf16 %v2349_v33  ;;  %2222 = vmatpush1.bf16.msra.mxu1 %v2221_v32  ;;  %v431_v36 = vsel %vm2994_vm2, %v2340_v31, %v2341_v30  ;;  %v2351_v37 = vunpack.i.h.bf16 %v2349_v33 }
  0x92   : > { %v395_v38 = vpop.permute.xlu0 %394  ;;  %v2207_v39 = vpack.c.bf16 %v431_v36, %v398_v35 }
  0x93   : > { %v430_v41 = vsel %vm2994_vm2, %v2350_v34, %v2340_v31  ;;  %v432_v46 = vsel %vm2994_vm2, %v2341_v30, %v2351_v37  ;;  %v400_v47 = vsel %vm2995_vm1, %v2346_v42, %v395_v38 }
  0x94   : > { %v2354_v43 = vpop.permute.xlu1 %2353  ;;  %2208 = vmatprep.subr.bf16.mxu0 %v2207_v39  ;;  %v2209_v44 = vpack.c.bf16 %v430_v41, %v397_v40  ;;  %v2225_v54 = vpack.c.bf16 %v432_v46, %v399_v51  ;;  %v800_v51 = vlaneseq }
  0x95   : > { %v2356_v52 = vunpack.i.h.bf16 %v2354_v43  ;;  %v2355_v53 = vunpack.i.l.bf16 %v2354_v43 }
  0x96   : > { %v428_v45 = vpop.permute.xlu0 %427  ;;  %2210 = vmatpush1.bf16.msra.mxu0 %v2209_v44 }
  0x97   : > { %v433_v48 = vsel %vm2994_vm2, %v2351_v37, %v428_v45  ;;  %v464_v61 = vsel %vm2993_vm3, %v2355_v53, %v2356_v52  ;;  %v643_v45 = vld [vmem:[%s2979_s1] sm:$0xff] }
  0x98   : > { %v2223_v49 = vpack.c.bf16 %v433_v48, %v400_v47  ;;  %v2364_v50 = vpop.permute.xlu1 %2363 }
  0x99   : > { %v2365_v56 = vunpack.i.l.bf16 %v2364_v50  ;;  %v2366_v4 = vunpack.i.h.bf16 %v2364_v50 }
  0x9a   : > { %v2359_v55 = vpop.permute.xlu0 %2358  ;;  %2224 = vmatprep.subr.bf16.mxu1 %v2223_v49 }
  0x9b   : > { %v2361_v57 = vunpack.i.h.bf16 %v2359_v55  ;;  %v2360_v58 = vunpack.i.l.bf16 %v2359_v55  ;;  %2226 = vmatpush1.bf16.msra.mxu1 %v2225_v54  ;;  %v463_v2 = vsel %vm2993_vm3, %v2365_v56, %v2355_v53  ;;  %v465_v15 = vsel %vm2993_vm3, %v2356_v52, %v2366_v4 }
  0x9c   : > { %v2369_v59 = vpop.permute.xlu1 %2368  ;;  %v801_v52 = vand.u32 127, %v800_v51 }
  0x9d   : > { %v2370_v60 = vunpack.i.l.bf16 %v2369_v59  ;;  %v497_v62 = vsel %vm2992_vm4, %v2360_v58, %v2361_v57  ;;  %v2371_v63 = vunpack.i.h.bf16 %v2369_v59 }
  0x9e   : > { %v461_v0 = vpop.permute.xlu0 %460  ;;  %v2211_v1 = vpack.c.bf16 %v497_v62, %v464_v61  ;;  %vm805_vm9 = vcmp.ge.s32.totalorder %v801_v52, 21  ;;  %vm809_vm10 = vcmp.lt.s32.totalorder %v801_v52, 37  ;;  %vm817_vm11 = vcmp.ge.s32.totalorder %v801_v52, 41 }
  0x9f   : > { %v496_v3 = vsel %vm2992_vm4, %v2370_v60, %v2360_v58  ;;  %v498_v10 = vsel %vm2992_vm4, %v2361_v57, %v2371_v63  ;;  %v466_v11 = vsel %vm2993_vm3, %v2366_v4, %v461_v0  ;;  %vm821_vm12 = vcmp.lt.s32.totalorder %v801_v52, 57  ;;  %vm813_vm13 = vmand %vm805_vm9, %vm809_vm10 }
  0xa0   : > { %v2374_v5 = vpop.permute.xlu1 %2373  ;;  %2212 = vmatprep.subr.bf16.mxu0 %v2211_v1  ;;  %v2213_v6 = vpack.c.bf16 %v496_v3, %v463_v2  ;;  %v2229_v18 = vpack.c.bf16 %v498_v10, %v465_v15  ;;  %vm825_vm14 = vmand %vm817_vm11, %vm821_vm12  ;;  %vm833_vm15 = vcmp.ge.s32.totalorder %v801_v52, 61  ;;  %v2718_v53 = vadd.s32 128, %v801_v52 }
  0xa1   : > { %v2376_v16 = vunpack.i.h.bf16 %v2374_v5  ;;  %v2375_v17 = vunpack.i.l.bf16 %v2374_v5  ;;  %vm865_vm1 = vcmp.ge.s32.totalorder %v801_v52, 101  ;;  %vm869_vm0 = vcmp.lt.s32.totalorder %v801_v52, 117 }
  0xa2   : > { %v494_v9 = vpop.permute.xlu0 %493  ;;  %2214 = vmatpush1.bf16.msra.mxu0 %v2213_v6  ;;  %vm898_vm9 = vcmp.ge.s32.totalorder %v2718_v53, 141  ;;  %vm902_vm10 = vcmp.lt.s32.totalorder %v2718_v53, 157  ;;  %vm873_vm12 = vmand %vm865_vm1, %vm869_vm0  ;;  %v803_v54 = vadd.s32 256, %v801_v52  ;;  %vm930_vm1 = vcmp.ge.s32.totalorder %v2718_v53, 181 }
  0xa3   : > { %v499_v12 = vsel %vm2992_vm4, %v2371_v63, %v494_v9  ;;  %v530_v25 = vsel %vm2991_vm5, %v2375_v17, %v2376_v16  ;;  %vm853_vm4 = vcmp.lt.s32.totalorder %v801_v52, 97 }
  0xa4   : > { %v2227_v13 = vpack.c.bf16 %v499_v12, %v466_v11  ;;  %v2384_v14 = vpop.permute.xlu1 %2383 }
  0xa5   : > { %v2385_v20 = vunpack.i.l.bf16 %v2384_v14  ;;  %v2386_v32 = vunpack.i.h.bf16 %v2384_v14 }
  0xa6   : > { %v2379_v19 = vpop.permute.xlu0 %2378  ;;  %2228 = vmatprep.subr.bf16.mxu1 %v2227_v13 }
  0xa7   : > { %v2381_v21 = vunpack.i.h.bf16 %v2379_v19  ;;  %v2380_v22 = vunpack.i.l.bf16 %v2379_v19  ;;  %2230 = vmatpush1.bf16.msra.mxu1 %v2229_v18  ;;  %v529_v30 = vsel %vm2991_vm5, %v2385_v20, %v2375_v17  ;;  %v531_v41 = vsel %vm2991_vm5, %v2376_v16, %v2386_v32 }
  0xa8   : > { %v2389_v23 = vpop.permute.xlu1 %2388 }
  0xa9   : > { %v2390_v24 = vunpack.i.l.bf16 %v2389_v23  ;;  %v563_v26 = vsel %vm2989_vm6, %v2380_v22, %v2381_v21  ;;  %v2391_v27 = vunpack.i.h.bf16 %v2389_v23 }
  0xaa   : > { %v527_v28 = vpop.permute.xlu0 %526  ;;  %v2215_v29 = vpack.c.bf16 %v563_v26, %v530_v25 }
  0xab   : > { %v562_v31 = vsel %vm2989_vm6, %v2390_v24, %v2380_v22  ;;  %v564_v36 = vsel %vm2989_vm6, %v2381_v21, %v2391_v27  ;;  %v532_v37 = vsel %vm2991_vm5, %v2386_v32, %v527_v28  ;;  %vm849_vm5 = vcmp.ge.s32.totalorder %v801_v52, 81 }
  0xac   : > { %v587_v33 = vpop.permute.xlu1 %586  ;;  %2216 = vmatprep.subr.bf16.mxu0 %v2215_v29  ;;  %v2217_v34 = vpack.c.bf16 %v562_v31, %v529_v30  ;;  %v2233_v42 = vpack.c.bf16 %v564_v36, %v531_v41  ;;  %vm857_vm2 = vmand %vm849_vm5, %vm853_vm4  ;;  %vm995_vm5 = vcmp.ge.s32.totalorder %v803_v54, 261 }
  0xae   : > { %v560_v35 = vpop.permute.xlu0 %559  ;;  %2218 = vmatpush1.bf16.msra.mxu0 %v2217_v34 }
  0xaf   : > { %v565_v38 = vsel %vm2989_vm6, %v2391_v27, %v560_v35  ;;  %vm829_vm6 = vmor %vm813_vm13, %vm825_vm14  ;;  %vm886_vm13 = vcmp.lt.s32.totalorder %v2718_v53, 137 }
  0xb0   : > { %v2231_v39 = vpack.c.bf16 %v565_v38, %v532_v37  ;;  %v585_v40 = vpop.permute.xlu1 %584  ;;  %vm906_vm14 = vmand %vm898_vm9, %vm902_vm10  ;;  %vm934_vm9 = vcmp.lt.s32.totalorder %v2718_v53, 197  ;;  %vm983_vm10 = vcmp.lt.s32.totalorder %v803_v54, 257 }
  0xb1   : > { %v595_v46 = vsel %vm2988_vm7, %v585_v40, %v587_v33  ;;  %vm2725_vm4 = vmor %vm886_vm13, %vm906_vm14  ;;  %vm1011_vm13 = vcmp.ge.s32.totalorder %v803_v54, 281  ;;  %vm1015_vm14 = vcmp.lt.s32.totalorder %v803_v54, 297 }
  0xb2   : > { %v589_v43 = vpop.permute.xlu0 %588  ;;  %2232 = vmatprep.subr.bf16.mxu1 %v2231_v39 }
  0xb3   : > { %2234 = vmatpush1.bf16.msra.mxu1 %v2233_v42  ;;  %v596_v44 = vsel %vm2988_vm7, %v587_v33, %v589_v43 }
  0xb4   : > { %670 = vmatprep.subr.mxu0 %v596_v44  ;;  %v593_v47 = vpop.permute.xlu1 %592 }
  0xb5   : > { %671 = vmatpush1.msra.mxu0 %v595_v46 }
  0xb6   : > { %v591_v48 = vpop.permute.xlu0 %590  ;;  %2187 = vmatmul.mubr.msk.f32.vlgmr.msra.gmra.mrb[0].mxu0 %vm2990_vm8, %v643_v45 }
  0xb7   : > { %v598_v49 = vsel %vm2988_vm7, %v591_v48, %v593_v47  ;;  %v597_v50 = vsel %vm2988_vm7, %v589_v43, %v591_v48  ;;  %1447 = vmatprep.mubr.f32.mxu0 %v2544_v7  ;;  %vm837_vm7 = vcmp.lt.s32.totalorder %v801_v52, 77 }
  0xb8   : > { %741 = vmatprep.subr.mxu1 %v598_v49  ;;  %v2743_v58 = vpop.permute.xlu1 %2394 }
  0xb9   : > { %742 = vmatpush1.msra.mxu1 %v597_v50  ;;  %v2397_v59 = vunpack.i.h.bf16 %v2743_v58  ;;  %v2396_v60 = vunpack.i.l.bf16 %v2743_v58 }
  0xba   : > { %2188 = vmatmul.mubr.msk.f32.vlgmr.msra.gmra.mrb[0].mxu1 %vm2990_vm8, %v643_v45  ;;  %vm841_vm8 = vmand %vm833_vm15, %vm837_vm7  ;;  %vm914_vm7 = vcmp.ge.s32.totalorder %v2718_v53, 161  ;;  %vm918_vm15 = vcmp.lt.s32.totalorder %v2718_v53, 177 }
  0xbb   : > { %1518 = vmatprep.mubr.f32.mxu1 %v2544_v7  ;;  %vm845_vm3 = vmor %vm829_vm6, %vm841_vm8  ;;  %vm881_vm8 = vcmp.ge.s32.totalorder %v801_v52, 121 }
  0xbc   : > { %vm861_vm11 = vmor %vm845_vm3, %vm857_vm2  ;;  %vm999_vm2 = vcmp.lt.s32.totalorder %v803_v54, 277 }
  0xbd   : > { %vm877_vm6 = vmor %vm861_vm11, %vm873_vm12 }
  0xbe   : > { %vm2729_vm3 = vmand %vm914_vm7, %vm918_vm15  ;;  %vm946_vm15 = vcmp.ge.s32.totalorder %v2718_v53, 201 }
  0xbf   : > { %vm2733_vm0 = vmor %vm877_vm6, %vm881_vm8  ;;  %vm950_vm6 = vcmp.lt.s32.totalorder %v2718_v53, 217 }
  0xc0   : > { %vm1003_vm11 = vmand %vm995_vm5, %vm999_vm2  ;;  %v2782_v4 = vsel %vm2733_vm0, 1, %v2546_v8 }
  0xc1   : > { %vm926_vm12 = vmor %vm2725_vm4, %vm2729_vm3  ;;  %vm3007_vm4 = vcmask 1039360   ;;  %vm1027_vm3 = vcmp.ge.s32.totalorder %v803_v54, 301 }
  0xc2   : > { %vm938_vm7 = vmand %vm930_vm1, %vm934_vm9  ;;  %v1104_v63 = vsel %vm3007_vm4, %v2396_v60, %v2397_v59  ;;  %vm1031_vm1 = vcmp.lt.s32.totalorder %v803_v54, 317 }
  0xc3   : > { %vm2749_vm8 = vmor %vm983_vm10, %vm1003_vm11  ;;  %v2253_v1 = vpack.c.bf16 %v1104_v63, %v2544_v7  ;;  %vm962_vm10 = vcmp.ge.s32.totalorder %v2718_v53, 221  ;;  %vm966_vm11 = vcmp.lt.s32.totalorder %v2718_v53, 237 }
  0xc4   : > { %vm2753_vm5 = vmand %vm1011_vm13, %vm1015_vm14 }
  0xc5   : > { %vm2760_vm2 = vmor %vm926_vm12, %vm938_vm7  ;;  %2254 = vmatprep.subr.bf16.mxu1 %v2253_v1  ;;  %vm1043_vm7 = vcmp.ge.s32.totalorder %v803_v54, 321 }
  0xc6   : > { %vm2765_vm9 = vmand %vm946_vm15, %vm950_vm6  ;;  %vm1047_vm15 = vcmp.lt.s32.totalorder %v803_v54, 337 }
  0xc7   : > { %vm1023_vm12 = vmor %vm2749_vm8, %vm2753_vm5  ;;  %v648_v3 = vpop.permute.xlu0 %647  ;;  %vm1061_vm5 = vcmp.eq.s32.totalorder %v2782_v4, 1 }
  0xc8   : > { %vm1035_vm13 = vmand %vm1027_vm3, %vm1031_vm1  ;;  %vm978_vm3 = vcmp.ge.s32.totalorder %v2718_v53, 241 }
  0xc9   : > { %vm958_vm14 = vmor %vm2760_vm2, %vm2765_vm9 }
  0xca   : > { %vm970_vm6 = vmand %vm962_vm10, %vm966_vm11  ;;  %vm2547_vm11 = vmmov 1  }
  0xcb   : > { %vm2784_vm4 = vmor %vm1023_vm12, %vm1035_vm13  ;;  %v2400_v24 = vpop.permute.xlu0 %2399  ;;  %vm3016_vm13 = vcmask 1031168  }
  0xcc   : > { %vm1051_vm8 = vmand %vm1043_vm7, %vm1047_vm15  ;;  %v2402_v33 = vunpack.i.h.bf16 %v2400_v24  ;;  %v2401_v34 = vunpack.i.l.bf16 %v2400_v24  ;;  %vm3018_vm7 = vcmask 1039360  }
  0xcd   : > { %vm974_vm2 = vmor %vm958_vm14, %vm970_vm6  ;;  %vm3017_vm14 = vcmask 883712  }
  0xce   : > { %vm1055_vm0 = vmor %vm2784_vm4, %vm1051_vm8  ;;  %v1136_v42 = vsel %vm3016_vm13, %v2401_v34, %v2402_v33 }
  0xcf   : > { %vm990_vm1 = vmor %vm974_vm2, %vm978_vm3  ;;  %v1059_v17 = vsel %vm1055_vm0, 1, %v2546_v8  ;;  %v2405_v25 = vpop.permute.xlu0 %2404  ;;  %vm3023_vm3 = vcmask 875520   ;;  %vm3024_vm0 = vcmask 867328  }
  0xd0   : > { %v1058_v18 = vsel %vm990_vm1, 1, %v2546_v8  ;;  %vm1063_vm9 = vcmp.eq.s32.totalorder %v1059_v17, 1  ;;  %v1374_v8 = vld [vmem:[%s2982_s4] sm:$0xff]  ;;  %v2407_v35 = vunpack.i.h.bf16 %v2405_v25  ;;  %v2406_v36 = vunpack.i.l.bf16 %v2405_v25  ;;  %vm3019_vm15 = vmmov %vm3018_vm7 }
  0xd1   : > { %vm1062_vm10 = vcmp.eq.s32.totalorder %v1058_v18, 1  ;;  %vm2838_vm12 = vmpackc.low %vm2547_vm11, %vm1063_vm9 }
  0xd2   : > { %v1168_v43 = vsel %vm3017_vm14, %v2406_v36, %v2407_v35  ;;  %vm3020_vm6 = vmmov %vm3018_vm7 }
  0xd3   : > { %v2825_v26 = vpop.permute.xlu0 %2409  ;;  %vm2236_vm4 = vmpackc.low %vm2547_vm11, %vm1062_vm10  ;;  %v2258_v53 = vpack.c.bf16 %v1168_v43, %v1136_v42 }
  0xd4   : > { %vm2239_vm8 = vmpackc.low %vm2547_vm11, %vm1061_vm5  ;;  %v2412_v51 = vunpack.i.h.bf16 %v2825_v26  ;;  %v2411_v52 = vunpack.i.l.bf16 %v2825_v26 }
  0xd5   : > { %vm3025_vm1 = vmmov %vm3017_vm14  ;;  %vm3031_vm14 = vcmask 719872  }
  0xd6   : > { %v1200_v0 = vsel %vm3023_vm3, %v2411_v52, %v2412_v51  ;;  %vm3028_vm11 = vmmov %vm3025_vm1 }
  0xd7   : > { %v2827_v27 = vpop.permute.xlu0 %2414 }
  0xd8   : > { %v2417_v54 = vunpack.i.h.bf16 %v2827_v27  ;;  %v2416_v55 = vunpack.i.l.bf16 %v2827_v27 }
  0xda   : > { %v1232_v1 = vsel %vm3024_vm0, %v2416_v55, %v2417_v54 }
  0xdb   : > { %v2829_v29 = vpop.permute.xlu0 %2419 }
  0xdf   : > { %v2833_v31 = vpop.permute.xlu0 %2424 }
 0x189   : > { %v720_v5 = vpop.f32.mrb[0].mxu0 }
 0x18a   : > { %v2788_v9 = vadd.f32 %v720_v5, %v648_v3  ;;  %v722_v10 = vpop.f32.mrb[1].mxu0 }
 0x18b   : > { %v723_v16 = vadd.f32 %v722_v10, %v648_v3 }
 0x18c   : > { %v796_v11 = vmax.f32 %v2788_v9, 0.0 }
 0x18d   : > { %v791_v12 = vpop.f32.mrb[0].mxu1  ;;  %v797_v20 = vmax.f32 %v723_v16, 0.0  ;;  %v2426_v16 = vunpack.i.l.bf16 %v2833_v31 }
 0x18e   : > { %v1065_v13 = vsel %vm1061_vm5, %v796_v11, 0.0  ;;  %v792_v14 = vadd.f32 %v791_v12, %v648_v3  ;;  %v793_v15 = vpop.f32.mrb[1].mxu1  ;;  %vm3021_vm5 = vmmov %vm3016_vm13  ;;  %v2422_v12 = vunpack.i.h.bf16 %v2829_v29 }
 0x18f   : > { %1123 = vrot.lane.b32.xlu1 %v1065_v13, %s2538_s16  ;;  %1091 = vrot.lane.b32.xlu0 %v1065_v13, %s2537_s15  ;;  %v1066_v22 = vsel %vm1062_vm10, %v797_v20, 0.0  ;;  %vm3022_vm2 = vmmov %vm3021_vm5  ;;  %v2427_v15 = vunpack.i.h.bf16 %v2833_v31 }
 0x190   : > { %v798_v19 = vmax.f32 %v792_v14, 0.0  ;;  %vm3027_vm10 = vmmov %vm3022_vm2  ;;  %v2262_v14 = vpack.c.bf16 %v1232_v1, %v1200_v0 }
 0x191   : > { %vm3030_vm13 = vmmov %vm3023_vm3 }
 0x192   : > { %v1067_v21 = vsel %vm1063_vm9, %v798_v19, 0.0  ;;  %vm3026_vm9 = vmmov %vm3025_vm1 }
 0x193   : > { %1187 = vrot.lane.b32.xlu1 %v1065_v13, %s2540_s18  ;;  %1155 = vrot.lane.b32.xlu0 %v1065_v13, %s2539_s17  ;;  %v2428_v23 = vpack.i.bf16 %v1067_v21, %v1066_v22 }
 0x197   : > { %1251 = vrot.lane.b32.xlu1 %v1065_v13, %s2542_s20  ;;  %1219 = vrot.lane.b32.xlu0 %v1065_v13, %s2541_s19 }
 0x19b   : > { %2429 = vrot.lane.b32.xlu1 %v2428_v23, %s2537_s15  ;;  %1283 = vrot.lane.b32.xlu0 %v1065_v13, %s2543_s21 }
 0x19f   : > { %2434 = vrot.lane.b32.xlu1 %v2428_v23, %s2538_s16  ;;  %1319 = vrot.lane.b32.xlu0 %v1067_v21, %s2545_s22 }
 0x1a3   : > { %2439 = vrot.lane.b32.xlu1 %v2428_v23, %s2539_s17  ;;  %1315 = vrot.lane.b32.xlu0 %v1065_v13, %s2545_s22  ;;  %v2421_v13 = vunpack.i.l.bf16 %v2829_v29 }
 0x1a5   : > { %v1264_v24 = vsel %vm3031_vm14, %v2421_v13, %v2422_v12 }
 0x1a7   : > { %2444 = vrot.lane.b32.xlu1 %v2428_v23, %s2540_s18 }
 0x1ab   : > { %2449 = vrot.lane.b32.xlu1 %v2428_v23, %s2541_s19 }
 0x1af   : > { %2454 = vrot.lane.b32.xlu1 %v2428_v23, %s2542_s20 }
 0x1b3   : > { %2459 = vrot.lane.b32.xlu1 %v2428_v23, %s2543_s21 }
 0x1b7   : > { %1317 = vrot.lane.b32.xlu1 %v1066_v22, %s2545_s22 }
 0x1bb   : > { %2464 = vrot.lane.b32.xlu1 %v2544_v7, %s2545_s22 }
 0x1bf   : > { %1377 = vperm.xlu1 %2468, %v1374_v8  }
 0x201   : > { %v1124_v28 = vpop.permute.xlu1 %1123  ;;  %v1092_v41 = vpop.permute.xlu0 %1091 }
 0x205   : > { %v2831_v30 = vpop.permute.xlu1 %1187  ;;  %v1156_v59 = vpop.permute.xlu0 %1155 }
 0x209   : > { %v2835_v32 = vpop.permute.xlu1 %1251 }
 0x20d   : > { %v2430_v37 = vpop.permute.xlu1 %2429 }
 0x20e   : > { %v2432_v38 = vunpack.i.h.bf16 %v2430_v37  ;;  %v2431_v39 = vunpack.i.l.bf16 %v2430_v37 }
 0x210   : > { %v1103_v44 = vsel %vm3018_vm7, %v2432_v38, %v2396_v60  ;;  %v1101_v45 = vsel %vm3019_vm15, %v1092_v41, %v2431_v39  ;;  %v1102_v46 = vsel %vm3020_vm6, %v2431_v39, %v2432_v38  ;;  %vm3032_vm7 = vcmask 711680   ;;  %vm3033_vm15 = vmmov %vm3024_vm0 }
 0x211   : > { %v2255_v47 = vpack.c.bf16 %v1103_v44, %v798_v19  ;;  %v2235_v48 = vpack.c.bf16 %v1102_v46, %v797_v20  ;;  %v2238_v49 = vpack.c.bf16 %v1101_v45, %v796_v11  ;;  %v2435_v50 = vpop.permute.xlu1 %2434  ;;  %v1220_v19 = vpop.permute.xlu0 %1219  ;;  %v1296_v25 = vsel %vm3032_vm7, %v2426_v16, %v2427_v15  ;;  %vm3034_vm6 = vmmov %vm3024_vm0 }
 0x212   : > { %v2437_v56 = vunpack.i.h.bf16 %v2435_v50  ;;  %v2436_v57 = vunpack.i.l.bf16 %v2435_v50  ;;  %v2266_v37 = vpack.c.bf16 %v1296_v25, %v1264_v24 }
 0x213   : > { %2237 = vmatprep.subr.msk.bf16.mxu0 %vm2236_vm4, %v2235_v48  ;;  %2257 = vmatpush1.bf16.msk.msra.mxu1 %vm2838_vm12, %v2255_v47  ;;  %vm3029_vm12 = vmmov %vm3023_vm3 }
 0x214   : > { %2240 = vmatpush1.bf16.msk.msra.mxu0 %vm2239_vm8, %v2238_v49  ;;  %2259 = vmatprep.subr.bf16.mxu1 %v2258_v53  ;;  %v1135_v62 = vsel %vm3021_vm5, %v2437_v56, %v2401_v34  ;;  %v1133_v63 = vsel %vm3022_vm2, %v1124_v28, %v2436_v57  ;;  %v1134_v4 = vsel %vm3027_vm10, %v2436_v57, %v2437_v56  ;;  %vm3035_vm4 = vmmov %vm3023_vm3  ;;  %vm3043_vm10 = vcmask 703488   ;;  %v1373_v57 = vld [vmem:[%s2981_s3] sm:$0xff] }
 0x215   : > { %v2440_v58 = vpop.permute.xlu1 %2439  ;;  %vm3036_vm8 = vmmov %vm3024_vm0 }
 0x216   : > { %v2442_v60 = vunpack.i.h.bf16 %v2440_v58  ;;  %v2441_v61 = vunpack.i.l.bf16 %v2440_v58  ;;  %vm3037_vm5 = vmmov %vm3031_vm14  ;;  %vm3047_vm14 = vcmask 588800  }
 0x217   : > { %vm3038_vm2 = vmmov %vm3037_vm5 }
 0x218   : > { %v1167_v2 = vsel %vm3025_vm1, %v2442_v60, %v2406_v36  ;;  %v1165_v3 = vsel %vm3026_vm9, %v1156_v59, %v2441_v61  ;;  %v1166_v5 = vsel %vm3028_vm11, %v2441_v61, %v2442_v60  ;;  %v1284_v36 = vpop.permute.xlu0 %1283  ;;  %vm3039_vm3 = vmmov %vm3032_vm7 }
 0x219   : > { %v2243_v6 = vpack.c.bf16 %v1165_v3, %v1133_v63  ;;  %v2260_v9 = vpack.c.bf16 %v1167_v2, %v1135_v62  ;;  %v2445_v10 = vpop.permute.xlu1 %2444  ;;  %v2241_v11 = vpack.c.bf16 %v1166_v5, %v1134_v4  ;;  %vm3040_vm0 = vmmov %vm3039_vm3 }
 0x21a   : > { %v2447_v17 = vunpack.i.h.bf16 %v2445_v10  ;;  %v2446_v18 = vunpack.i.l.bf16 %v2445_v10  ;;  %vm3041_vm1 = vmmov %vm3038_vm2 }
 0x21b   : > { %2242 = vmatprep.subr.bf16.mxu0 %v2241_v11  ;;  %2261 = vmatpush1.bf16.msra.mxu1 %v2260_v9  ;;  %vm3042_vm9 = vmmov %vm3040_vm0 }
 0x21c   : > { %2244 = vmatpush1.bf16.msra.mxu0 %v2243_v6  ;;  %2263 = vmatprep.subr.bf16.mxu1 %v2262_v14  ;;  %v1199_v23 = vsel %vm3029_vm12, %v2447_v17, %v2411_v52  ;;  %v1197_v8 = vsel %vm3030_vm13, %v2831_v30, %v2446_v18  ;;  %v1198_v28 = vsel %vm3035_vm4, %v2446_v18, %v2447_v17  ;;  %v1320_v44 = vpop.permute.xlu0 %1319  ;;  %vm3044_vm11 = vmmov %vm3043_vm10  ;;  %v1654_v14 = vld [vmem:[%s2984_s6] sm:$0xff] }
 0x21d   : > { %v2450_v20 = vpop.permute.xlu1 %2449  ;;  %vm3045_vm12 = vmmov %vm3043_vm10 }
 0x21e   : > { %v2452_v21 = vunpack.i.h.bf16 %v2450_v20  ;;  %v2451_v22 = vunpack.i.l.bf16 %v2450_v20  ;;  %vm3046_vm13 = vmmov %vm3043_vm10 }
 0x21f   : > { %vm3048_vm7 = vmmov %vm3047_vm14 }
 0x220   : > { %v1231_v26 = vsel %vm3033_vm15, %v2452_v21, %v2416_v55  ;;  %v1229_v27 = vsel %vm3034_vm6, %v1220_v19, %v2451_v22  ;;  %v1230_v29 = vsel %vm3036_vm8, %v2451_v22, %v2452_v21  ;;  %vm3049_vm15 = vcmask 1039360  }
 0x221   : > { %v2247_v31 = vpack.c.bf16 %v1229_v27, %v1197_v8  ;;  %v2264_v33 = vpack.c.bf16 %v1231_v26, %v1199_v23  ;;  %v2455_v34 = vpop.permute.xlu1 %2454  ;;  %v2245_v35 = vpack.c.bf16 %v1230_v29, %v1198_v28  ;;  %vm3050_vm6 = vmmov %vm3049_vm15 }
 0x222   : > { %v2457_v38 = vunpack.i.h.bf16 %v2455_v34  ;;  %v2456_v30 = vunpack.i.l.bf16 %v2455_v34  ;;  %vm3051_vm4 = vmmov %vm3050_vm6 }
 0x223   : > { %2246 = vmatprep.subr.bf16.mxu0 %v2245_v35  ;;  %2265 = vmatpush1.bf16.msra.mxu1 %v2264_v33  ;;  %vm3052_vm8 = vmmov %vm3051_vm4 }
 0x224   : > { %2248 = vmatpush1.bf16.msra.mxu0 %v2247_v31  ;;  %2267 = vmatprep.subr.bf16.mxu1 %v2266_v37  ;;  %v1263_v42 = vsel %vm3037_vm5, %v2457_v38, %v2421_v13  ;;  %v1261_v43 = vsel %vm3038_vm2, %v2835_v32, %v2456_v30  ;;  %v1262_v47 = vsel %vm3041_vm1, %v2456_v30, %v2457_v38  ;;  %v1316_v32 = vpop.permute.xlu0 %1315  ;;  %vm3053_vm5 = vcmask 875520  }
 0x225   : > { %v2460_v39 = vpop.permute.xlu1 %2459  ;;  %vm3054_vm2 = vcmask 883712  }
 0x226   : > { %v2462_v40 = vunpack.i.h.bf16 %v2460_v39  ;;  %v2461_v41 = vunpack.i.l.bf16 %v2460_v39  ;;  %vm3057_vm1 = vmmov %vm3054_vm2 }
 0x228   : > { %v1295_v45 = vsel %vm3039_vm3, %v2462_v40, %v2426_v16  ;;  %v1293_v46 = vsel %vm3040_vm0, %v1284_v36, %v2461_v41  ;;  %v1294_v48 = vsel %vm3042_vm9, %v2461_v41, %v2462_v40  ;;  %vm3055_vm3 = vmmov %vm3054_vm2 }
 0x229   : > { %v2251_v49 = vpack.c.bf16 %v1293_v46, %v1261_v43  ;;  %v2268_v50 = vpack.c.bf16 %v1295_v45, %v1263_v42  ;;  %v1318_v51 = vpop.permute.xlu1 %1317  ;;  %v2249_v52 = vpack.c.bf16 %v1294_v48, %v1262_v47  ;;  %vm3056_vm0 = vmmov %vm3053_vm5 }
 0x22a   : > { %v1326_v53 = vsel %vm3043_vm10, %v1318_v51, %v1320_v44  ;;  %v1325_v58 = vsel %vm3044_vm11, %v1316_v32, %v1318_v51  ;;  %vm3058_vm9 = vmmov %vm3056_vm0 }
 0x22b   : > { %2250 = vmatprep.subr.bf16.mxu0 %v2249_v52  ;;  %2269 = vmatpush1.bf16.msra.mxu1 %v2268_v50  ;;  %vm3059_vm10 = vmmov %vm3057_vm1 }
 0x22c   : > { %2252 = vmatpush1.bf16.msra.mxu0 %v2251_v49  ;;  %vm3060_vm11 = vmmov %vm3056_vm0 }
 0x22d   : > { %v2465_v54 = vpop.permute.xlu1 %2464  ;;  %1399 = vmatprep.subr.mxu0 %v1326_v53 }
 0x22e   : > { %v2467_v55 = vunpack.i.h.bf16 %v2465_v54  ;;  %v2466_v56 = vunpack.i.l.bf16 %v2465_v54 }
 0x230   : > { %1400 = vmatpush1.msra.mxu0 %v1325_v58  ;;  %v1328_v59 = vsel %vm3045_vm12, %v2466_v56, %v2467_v55  ;;  %v1327_v60 = vsel %vm3046_vm13, %v1320_v44, %v2466_v56  ;;  %v1653_v55 = vld [vmem:[%s2983_s5] sm:$0xff]  ;;  %vm1660_vm12 = vcmask 261120   ;;  %vm3061_vm13 = vmmov %vm3051_vm4 }
 0x231   : > { %1470 = vmatprep.subr.mxu1 %v1328_v59  ;;  %2189 = vmatmul.mubr.msk.f32.vlgmr.msra.gmra.mrb[2].mxu0 %vm3047_vm14, %v1373_v57  ;;  %vm3062_vm14 = vmmov %vm3051_vm4 }
 0x232   : > { %1471 = vmatpush1.msra.mxu1 %v1327_v60  ;;  %1728 = vmatprep.mubr.f32.mxu0 %v2544_v7 }
 0x233   : > { %2190 = vmatmul.mubr.msk.f32.vlgmr.msra.gmra.mrb[2].mxu1 %vm3048_vm7, %v1373_v57  ;;  %vm3063_vm7 = vmmov %vm3051_vm4 }
 0x234   : > { %1799 = vmatprep.mubr.f32.mxu1 %v2544_v7 }
 0x23e   : > { %v1378_v62 = vpop.permute.xlu1 %1377 }
 0x304   : > { %v1449_v61 = vpop.f32.mrb[2].mxu0 }
 0x305   : > { %v1451_v63 = vpop.f32.mrb[3].mxu0  ;;  %v1450_v6 = vadd.f32 %v1449_v61, %v1378_v62 }
 0x306   : > { %v1520_v0 = vpop.f32.mrb[2].mxu1  ;;  %v1452_v2 = vadd.f32 %v1451_v63, %v1378_v62 }
 0x307   : > { %v1522_v1 = vpop.f32.mrb[3].mxu1  ;;  %v1521_v3 = vadd.f32 %v1520_v0, %v1378_v62  ;;  %v1525_v12 = vmax.f32 %v1450_v6, 0.0 }
 0x308   : > { %v1523_v4 = vadd.f32 %v1522_v1, %v1378_v62  ;;  %v1526_v9 = vmax.f32 %v1452_v2, 0.0 }
 0x309   : > { %v1527_v10 = vmax.f32 %v1521_v3, 0.0 }
 0x30a   : > { %v1528_v5 = vmax.f32 %v1523_v4, 0.0 }
 0x30b   : > { %v2489_v13 = vpack.i.bf16 %v1527_v10, %v1526_v9 }
 0x30c   : > { %v2474_v11 = vpack.i.bf16 %v2544_v7, %v1528_v5 }
 0x30e   : > { %2475 = vrot.lane.b32.xlu0 %v2474_v11, %s2539_s17  ;;  %2470 = vrot.lane.b32.xlu1 %v2474_v11, %s2537_s15 }
 0x312   : > { %2490 = vrot.lane.b32.xlu1 %v2489_v13, %s2539_s17  ;;  %1551 = vrot.lane.b32.xlu0 %v1525_v12, %s2537_s15 }
 0x316   : > { %2495 = vrot.lane.b32.xlu1 %v2489_v13, %s2540_s18  ;;  %2480 = vrot.lane.b32.xlu0 %v2489_v13, %s2537_s15 }
 0x31a   : > { %1583 = vrot.lane.b32.xlu1 %v1525_v12, %s2539_s17  ;;  %2485 = vrot.lane.b32.xlu0 %v2474_v11, %s2540_s18 }
 0x31e   : > { %1657 = vperm.xlu1 %2468, %v1654_v14   ;;  %1615 = vrot.lane.b32.xlu0 %v1525_v12, %s2540_s18 }
 0x380   : > { %v2471_v15 = vpop.permute.xlu1 %2470  ;;  %v2476_v16 = vpop.permute.xlu0 %2475 }
 0x381   : > { %v2473_v17 = vunpack.i.h.bf16 %v2471_v15  ;;  %v2472_v18 = vunpack.i.l.bf16 %v2471_v15  ;;  %v2478_v31 = vunpack.i.h.bf16 %v2476_v16  ;;  %v2477_v33 = vunpack.i.l.bf16 %v2476_v16 }
 0x383   : > { %v1564_v19 = vsel %vm3049_vm15, %v2472_v18, %v2473_v17  ;;  %v1596_v48 = vsel %vm3057_vm1, %v2477_v33, %v2478_v31  ;;  %vm3064_vm15 = vmmov %vm3051_vm4 }
 0x384   : > { %v2491_v20 = vpop.permute.xlu1 %2490  ;;  %v1552_v21 = vpop.permute.xlu0 %1551  ;;  %v2278_v22 = vpack.c.bf16 %v1564_v19, %v1528_v5 }
 0x385   : > { %v2493_v23 = vunpack.i.h.bf16 %v2491_v20  ;;  %v2492_v8 = vunpack.i.l.bf16 %v2491_v20 }
 0x386   : > { %2279 = vmatprep.subr.bf16.mxu1 %v2278_v22 }
 0x387   : > { %v1594_v43 = vsel %vm3054_vm2, %v2492_v8, %v2493_v23  ;;  %v1595_v46 = vsel %vm3055_vm3, %v2493_v23, %v2477_v33  ;;  %vm3069_vm2 = vmmov %vm3057_vm1 }
 0x388   : > { %v2496_v24 = vpop.permute.xlu1 %2495  ;;  %v2481_v25 = vpop.permute.xlu0 %2480  ;;  %vm3070_vm3 = vmmov %vm3056_vm0 }
 0x389   : > { %v2498_v26 = vunpack.i.h.bf16 %v2496_v24  ;;  %v2497_v27 = vunpack.i.l.bf16 %v2496_v24  ;;  %v2483_v28 = vunpack.i.h.bf16 %v2481_v25  ;;  %v2482_v29 = vunpack.i.l.bf16 %v2481_v25 }
 0x38b   : > { %v1563_v34 = vsel %vm3050_vm6, %v2483_v28, %v2472_v18  ;;  %v1561_v35 = vsel %vm3051_vm4, %v1552_v21, %v2482_v29  ;;  %v1562_v36 = vsel %vm3052_vm8, %v2482_v29, %v2483_v28  ;;  %v1626_v37 = vsel %vm3053_vm5, %v2497_v27, %v2498_v26  ;;  %vm3065_vm6 = vmmov %vm3056_vm0 }
 0x38c   : > { %v2280_v38 = vpack.c.bf16 %v1563_v34, %v1527_v10  ;;  %v2272_v30 = vpack.c.bf16 %v1561_v35, %v1525_v12  ;;  %v2486_v39 = vpop.permute.xlu0 %2485  ;;  %v2270_v40 = vpack.c.bf16 %v1562_v36, %v1526_v9  ;;  %v1584_v44 = vpop.permute.xlu1 %1583  ;;  %v2274_v45 = vpack.c.bf16 %v1626_v37, %v1594_v43  ;;  %v1936_v9 = vld [vmem:[%s2986_s8] sm:$0xff]  ;;  %v1937_v10 = vld [vmem:[%s2986_s8 + $0x8] sm:$0xff]  ;;  %vm3066_vm4 = vmmov %vm3057_vm1 }
 0x38d   : > { %v2488_v41 = vunpack.i.h.bf16 %v2486_v39  ;;  %v2487_v42 = vunpack.i.l.bf16 %v2486_v39  ;;  %v1593_v53 = vsel %vm3059_vm10, %v1584_v44, %v2492_v8  ;;  %vm3067_vm8 = vmmov %vm3057_vm1 }
 0x38e   : > { %2271 = vmatprep.subr.bf16.mxu0 %v2270_v40  ;;  %2281 = vmatpush1.bf16.msra.mxu1 %v2280_v38  ;;  %vm3068_vm5 = vmmov %vm3056_vm0 }
 0x38f   : > { %v1627_v47 = vsel %vm3056_vm0, %v2498_v26, %v2487_v42  ;;  %2273 = vmatpush1.bf16.msra.mxu0 %v2272_v30  ;;  %v1628_v49 = vsel %vm3058_vm9, %v2487_v42, %v2488_v41  ;;  %vm3071_vm0 = vmmov %vm3057_vm1 }
 0x390   : > { %v2284_v50 = vpack.c.bf16 %v1627_v47, %v1595_v46  ;;  %v1616_v51 = vpop.permute.xlu0 %1615  ;;  %2275 = vmatprep.subr.bf16.mxu0 %v2274_v45  ;;  %v2282_v52 = vpack.c.bf16 %v1628_v49, %v1596_v48  ;;  %vm3072_vm1 = vmmov %vm3070_vm3 }
 0x391   : > { %v1625_v54 = vsel %vm3060_vm11, %v1616_v51, %v2497_v27 }
 0x392   : > { %v2276_v32 = vpack.c.bf16 %v1625_v54, %v1593_v53  ;;  %2283 = vmatprep.subr.bf16.mxu1 %v2282_v52  ;;  %v1934_v52 = vld [vmem:[%s2985_s7] sm:$0xff]  ;;  %v1935_v53 = vld [vmem:[%s2985_s7 + $0x8] sm:$0xff] }
 0x393   : > { %2285 = vmatpush1.bf16.msra.mxu1 %v2284_v50 }
 0x394   : > { %2277 = vmatpush1.bf16.msra.mxu0 %v2276_v32 }
 0x396   : > { %2192 = vmatmul.mubr.msk.f32.vlgmr.msra.gmra.mrb[4].mxu1 %vm1660_vm12, %v1653_v55 }
 0x397   : > { %2191 = vmatmul.mubr.msk.f32.vlgmr.msra.gmra.mrb[4].mxu0 %vm1660_vm12, %v1653_v55  ;;  %2095 = vmatprep.mubr.f32.mxu1 %v2544_v7 }
 0x398   : > { %2018 = vmatprep.mubr.f32.mxu0 %v2544_v7 }
 0x39d   : > { %v1658_v56 = vpop.permute.xlu1 %1657 }
 0x469   : > { %v1801_v57 = vpop.f32.mrb[4].mxu1 }
 0x46a   : > { %v1730_v58 = vpop.f32.mrb[4].mxu0  ;;  %v1803_v59 = vpop.f32.mrb[5].mxu1  ;;  %v1802_v63 = vadd.f32 %v1801_v57, %v1658_v56 }
 0x46b   : > { %v1804_v60 = vadd.f32 %v1803_v59, %v1658_v56  ;;  %v1732_v61 = vpop.f32.mrb[5].mxu0  ;;  %v1731_v1 = vadd.f32 %v1730_v58, %v1658_v56 }
 0x46c   : > { %v1733_v62 = vadd.f32 %v1732_v61, %v1658_v56  ;;  %v1808_v4 = vmax.f32 %v1802_v63, 0.0 }
 0x46d   : > { %v1809_v0 = vmax.f32 %v1804_v60, 0.0  ;;  %v1806_v5 = vmax.f32 %v1731_v1, 0.0 }
 0x46e   : > { %v1807_v2 = vmax.f32 %v1733_v62, 0.0 }
 0x46f   : > { %v2504_v3 = vpack.i.bf16 %v2544_v7, %v1809_v0 }
 0x470   : > { %v2519_v6 = vpack.i.bf16 %v1808_v4, %v1807_v2 }
 0x471   : > { %2505 = vrot.lane.b32.xlu0 %v2504_v3, %s2539_s17  ;;  %2500 = vrot.lane.b32.xlu1 %v2504_v3, %s2537_s15 }
 0x475   : > { %1832 = vrot.lane.b32.xlu0 %v1806_v5, %s2537_s15  ;;  %2520 = vrot.lane.b32.xlu1 %v2519_v6, %s2539_s17 }
 0x479   : > { %2525 = vrot.lane.b32.xlu1 %v2519_v6, %s2540_s18  ;;  %2510 = vrot.lane.b32.xlu0 %v2519_v6, %s2537_s15 }
 0x47d   : > { %1864 = vrot.lane.b32.xlu1 %v1806_v5, %s2539_s17  ;;  %2515 = vrot.lane.b32.xlu0 %v2504_v3, %s2540_s18 }
 0x481   : > { %1940 = vperm.xlu1 %2468, %v1936_v9   ;;  %1896 = vrot.lane.b32.xlu0 %v1806_v5, %s2540_s18 }
 0x485   : > { %1945 = vperm.xlu0 %2392, %v1937_v10  }
 0x4e3   : > { %v2506_v11 = vpop.permute.xlu0 %2505  ;;  %v2501_v12 = vpop.permute.xlu1 %2500 }
 0x4e4   : > { %v2503_v13 = vunpack.i.h.bf16 %v2501_v12  ;;  %v2502_v14 = vunpack.i.l.bf16 %v2501_v12  ;;  %v2508_v26 = vunpack.i.h.bf16 %v2506_v11  ;;  %v2507_v27 = vunpack.i.l.bf16 %v2506_v11 }
 0x4e6   : > { %v1845_v15 = vsel %vm3061_vm13, %v2502_v14, %v2503_v13  ;;  %v1877_v44 = vsel %vm3069_vm2, %v2507_v27, %v2508_v26 }
 0x4e7   : > { %v1833_v16 = vpop.permute.xlu0 %1832  ;;  %v2521_v17 = vpop.permute.xlu1 %2520  ;;  %v2294_v18 = vpack.c.bf16 %v1845_v15, %v1809_v0 }
 0x4e8   : > { %v2523_v19 = vunpack.i.h.bf16 %v2521_v17  ;;  %v2522_v20 = vunpack.i.l.bf16 %v2521_v17 }
 0x4e9   : > { %2295 = vmatprep.subr.bf16.mxu1 %v2294_v18 }
 0x4ea   : > { %v1875_v39 = vsel %vm3066_vm4, %v2522_v20, %v2523_v19  ;;  %v1876_v42 = vsel %vm3067_vm8, %v2523_v19, %v2507_v27 }
 0x4eb   : > { %v2526_v21 = vpop.permute.xlu1 %2525  ;;  %v2511_v22 = vpop.permute.xlu0 %2510 }
 0x4ec   : > { %v2528_v23 = vunpack.i.h.bf16 %v2526_v21  ;;  %v2527_v8 = vunpack.i.l.bf16 %v2526_v21  ;;  %v2513_v24 = vunpack.i.h.bf16 %v2511_v22  ;;  %v2512_v25 = vunpack.i.l.bf16 %v2511_v22 }
 0x4ee   : > { %v1844_v28 = vsel %vm3062_vm14, %v2513_v24, %v2502_v14  ;;  %v1842_v29 = vsel %vm3063_vm7, %v1833_v16, %v2512_v25  ;;  %v1843_v31 = vsel %vm3064_vm15, %v2512_v25, %v2513_v24  ;;  %v1907_v33 = vsel %vm3065_vm6, %v2527_v8, %v2528_v23 }
 0x4ef   : > { %v2296_v34 = vpack.c.bf16 %v1844_v28, %v1808_v4  ;;  %v2288_v35 = vpack.c.bf16 %v1842_v29, %v1806_v5  ;;  %v2516_v36 = vpop.permute.xlu0 %2515  ;;  %v2286_v37 = vpack.c.bf16 %v1843_v31, %v1807_v2  ;;  %v1865_v40 = vpop.permute.xlu1 %1864  ;;  %v2290_v41 = vpack.c.bf16 %v1907_v33, %v1875_v39 }
 0x4f0   : > { %v2518_v38 = vunpack.i.h.bf16 %v2516_v36  ;;  %v2517_v30 = vunpack.i.l.bf16 %v2516_v36  ;;  %v1874_v49 = vsel %vm3071_vm0, %v1865_v40, %v2522_v20 }
 0x4f1   : > { %2287 = vmatprep.subr.bf16.mxu0 %v2286_v37  ;;  %2297 = vmatpush1.bf16.msra.mxu1 %v2296_v34 }
 0x4f2   : > { %v1908_v43 = vsel %vm3068_vm5, %v2528_v23, %v2517_v30  ;;  %2289 = vmatpush1.bf16.msra.mxu0 %v2288_v35  ;;  %v1909_v45 = vsel %vm3070_vm3, %v2517_v30, %v2518_v38 }
 0x4f3   : > { %v2300_v46 = vpack.c.bf16 %v1908_v43, %v1876_v42  ;;  %v1897_v47 = vpop.permute.xlu0 %1896  ;;  %2291 = vmatprep.subr.bf16.mxu0 %v2290_v41  ;;  %v2298_v48 = vpack.c.bf16 %v1909_v45, %v1877_v44 }
 0x4f4   : > { %v1906_v50 = vsel %vm3072_vm1, %v1897_v47, %v2527_v8 }
 0x4f5   : > { %v2292_v51 = vpack.c.bf16 %v1906_v50, %v1874_v49  ;;  %2299 = vmatprep.subr.bf16.mxu1 %v2298_v48 }
 0x4f6   : > { %2301 = vmatpush1.bf16.msra.mxu1 %v2300_v46 }
 0x4f7   : > { %2293 = vmatpush1.bf16.msra.mxu0 %v2292_v51 }
 0x4f9   : > { %2195 = vmatmul.mubr.msk.f32.vlgmr.msra.gmra.mrb[6].mxu1 %vm1660_vm12, %v1934_v52 }
 0x4fa   : > { %2193 = vmatmul.mubr.msk.f32.vlgmr.msra.gmra.mrb[6].mxu0 %vm1660_vm12, %v1934_v52  ;;  %2101 = vmatprep.mubr.f32.mxu1 %v2544_v7 }
 0x4fb   : > { %2024 = vmatprep.mubr.f32.mxu0 %v2544_v7 }
 0x4fd   : > { %2196 = vmatmul.mubr.msk.f32.gmra.mrb[8].mxu1 %vm1660_vm12, %v1935_v53 }
 0x4fe   : > { %2194 = vmatmul.mubr.msk.f32.gmra.mrb[8].mxu0 %vm1660_vm12, %v1935_v53 }
 0x500   : > { %v1941_v54 = vpop.permute.xlu1 %1940 }
 0x504   : > { %v1946_v7 = vpop.permute.xlu0 %1945 }
 0x5cc   : > { %v2097_v32 = vpop.f32.mrb[6].mxu1 }
 0x5cd   : > { %v2098_v55 = vadd.f32 %v2097_v32, %v1941_v54  ;;  %v2020_v56 = vpop.f32.mrb[6].mxu0  ;;  %v2099_v57 = vpop.f32.mrb[7].mxu1 }
 0x5ce   : > { %v2021_v58 = vadd.f32 %v2020_v56, %v1941_v54  ;;  %v2100_v59 = vadd.f32 %v2099_v57, %v1941_v54  ;;  %v2022_v60 = vpop.f32.mrb[7].mxu0 }
 0x5cf   : > { %v2110_v61 = vmax.f32 %v2098_v55, 0.0  ;;  %v2023_v62 = vadd.f32 %v2022_v60, %v1941_v54 }
 0x5d0   : > { %v2108_v63 = vmax.f32 %v2021_v58, 0.0  ;;  %v2111_v0 = vmax.f32 %v2100_v59, 0.0  ;;  %v2103_v1 = vpop.f32.mrb[8].mxu1 }
 0x5d1   : > { %2118 = vst [vmem:[%s332_s27 + $0x10] sm:$0xff] %v2110_v61  ;;  %v2109_v2 = vmax.f32 %v2023_v62, 0.0  ;;  %v2104_v3 = vadd.f32 %v2103_v1, %v1946_v7  ;;  %v2026_v4 = vpop.f32.mrb[8].mxu0  ;;  %v2105_v5 = vpop.f32.mrb[9].mxu1 }
 0x5d2   : > { %2116 = vst [vmem:[%s332_s27] sm:$0xff] %v2108_v63  ;;  %2119 = vst [vmem:[%s332_s27 + $0x18] sm:$0xff] %v2111_v0  ;;  %v2027_v6 = vadd.f32 %v2026_v4, %v1946_v7  ;;  %v2106_v9 = vadd.f32 %v2105_v5, %v1946_v7  ;;  %v2028_v10 = vpop.f32.mrb[9].mxu0 }
 0x5d3   : > { %2117 = vst [vmem:[%s332_s27 + $0x8] sm:$0xff] %v2109_v2  ;;  %v2114_v11 = vmax.f32 %v2104_v3, 0.0  ;;  %v2029_v12 = vadd.f32 %v2028_v10, %v1946_v7 }
 0x5d4   : > { %v2112_v13 = vmax.f32 %v2027_v6, 0.0  ;;  %v2115_v14 = vmax.f32 %v2106_v9, 0.0 }
 0x5d5   : > { %2122 = vst [vmem:[%s332_s27 + $0x30] sm:$0xff] %v2114_v11  ;;  %v2113_v15 = vmax.f32 %v2029_v12, 0.0 }
 0x5d6   : > { %2120 = vst [vmem:[%s332_s27 + $0x20] sm:$0xff] %v2112_v13  ;;  %2123 = vst [vmem:[%s332_s27 + $0x38] sm:$0xff] %v2115_v14 }
 0x5d7   : > { %2121 = vst [vmem:[%s332_s27 + $0x28] sm:$0xff] %v2113_v15 }
 0x5d8 PF: > { %s19_s30 = sadd.s32 1, %s2535_s30  }
 0x5d9   : > { %p16_p4 = scmp.ge.s32.totalorder %s19_s30, 4  }
 0x5db   :  { %18 = sbr.rel (!%p16_p4) target bundleno = 1 (0x1), region = 86 }

</bundles_post_ra>
